<compile_context>
chip_gen: v6e
topology: v6e:2x2x1
jax: 0.10.0
libtpu: 0.0.40
codegen_flags: <defaults>
</compile_context>

<pallas_src>
import functools

import jax
import jax.numpy as jnp
from jax.experimental import pallas as pl
from jax.experimental.pallas import tpu as pltpu


def _round_up(x, m):
    return ((x + m - 1) // m) * m


def _vmem_budget():
    """Return (tile_budget_bytes, vmem_limit_bytes).  Uses the per-core VMEM
    capacity when queryable; falls back to the v7x 64 MiB floor (safe on all
    generations)."""
    cap = 64 * 1024 * 1024
    try:
        cap = int(getattr(pltpu.get_tpu_info(), "vmem_capacity_bytes", cap))
    except Exception:
        pass
    cap = min(cap, 128 * 1024 * 1024)
    budget = max(int(cap * 0.70), 16 * 1024 * 1024)
    limit = int(cap * 0.90)
    return budget, limit


def _pick_batch_tile(Bp):
    """Largest multiple-of-16 batch tile that divides Bp, keeps >= 2 grid steps
    on the 'parallel' axis (v7x has 2 TensorCores), capped at 256 rows."""
    best = 16
    cap = min(Bp // 2, 256)
    tb = 16
    while tb <= cap:
        if Bp % tb == 0:
            best = tb
        tb += 16
    return best


def _pick_time_chunk(T, TB, Hp, Op, budget_bytes):
    """Largest T-chunk whose double-buffered xp/y blocks + resident weights +
    h carry fit the VMEM budget."""
    fixed = (2 * Hp * Hp * 2          # W_hh^T (bf16, double-buffered)
             + 2 * Hp * Op * 2        # W_fc^T (bf16, double-buffered)
             + TB * Hp * 4            # h carry scratch (f32)
             + 2 * TB * Hp * 4)       # h0 block (f32, double-buffered)
    per_t = 2 * TB * 4 * (Hp + Op)    # double-buffered xp + y rows per timestep
    tc = (budget_bytes - fixed) // per_t
    return int(max(1, min(T, tc)))


def rnn_fused_kernel(xp_ref, h0_ref, whh_ref, wfc_ref, y_ref, h_ref, *,
                     n_sub, unroll):
    """One (batch-tile, T-chunk) grid step of the fused recurrence + readout.

    xp_ref : (TC, TB, Hp) f32   precomputed input projection, this T-chunk
    h0_ref : (TB, Hp)     f32   initial hidden state for this batch tile
    whh_ref: (Hp, Hp)     bf16  W_hh^T (resident recurrent weight)
    wfc_ref: (Hp, Op)     bf16  W_fc^T (resident readout weight, Op lane-padded)
    y_ref  : (TC, TB, Op) f32   fused readout output for this T-chunk
    h_ref  : (TB, Hp)     f32   VMEM scratch: h carried across T-chunks
    """
    # Initialize the carried hidden state at the first T-chunk of each batch tile.
    @pl.when(pl.program_id(1) == 0)
    def _():
        h_ref[...] = h0_ref[...]

    TC, TB, _ = xp_ref.shape
    sub = TB // n_sub

    # Hoist the resident weights out of the latency-critical loop.
    whh = whh_ref[...]
    wfc = wfc_ref[...]

    def step(t, carry):
        del carry
        xp_t = xp_ref[t]                                  # (TB, Hp) f32
        ys = []
        # Batch rows are independent: split the tile into sub-tiles and issue
        # their recurrent matmuls back-to-back so one sub-tile's MXU drain and
        # EUP tanh hide behind the next sub-tile's matmul.
        for s in range(n_sub):
            lo = s * sub
            h_prev = h_ref[lo:lo + sub, :].astype(jnp.bfloat16)
            pre = xp_t[lo:lo + sub, :] + jnp.dot(
                h_prev, whh, preferred_element_type=jnp.float32)
            h_new = jnp.tanh(pre)                         # f32 carry / EUP
            h_ref[lo:lo + sub, :] = h_new
            # Fused readout: off the h critical path, lane-dense Op block.
            ys.append(jnp.dot(h_new.astype(jnp.bfloat16), wfc,
                              preferred_element_type=jnp.float32))
        y_ref[t] = ys[0] if n_sub == 1 else jnp.concatenate(ys, axis=0)
        return 0

    # Bounded unroll: enough scheduling window to overlap EUP/loads with the
    # MXU without exploding code size / vreg pressure at production T.
    jax.lax.fori_loop(0, TC, step, 0, unroll=unroll)


def rnn_forward(x, h0, w_ih, w_hh, w_fc):
    """x: (B, T, I); h0: (B, H); PyTorch-layout weights:
       w_ih: (H, I), w_hh: (H, H), w_fc: (O, H).  Returns (B, T, O) f32."""
    B, T, I = x.shape
    H = w_hh.shape[0]
    O = w_fc.shape[0]
    f32 = jnp.float32

    x = x.astype(f32)
    h0 = h0.astype(f32)

    # Lane-dense padding: H and O to multiples of 128; batch to a multiple of 16
    # with at least 2 batch tiles (v7x megacore).  Zero padding is exact: padded
    # hidden units stay tanh(0)=0 and padded output lanes are sliced off.
    Hp = _round_up(max(H, 128), 128)
    Op = _round_up(max(O, 128), 128)
    Bp = max(32, _round_up(B, 16))

    w_ih_t = jnp.zeros((I, Hp), f32).at[:, :H].set(w_ih.T.astype(f32))       # (I, Hp)
    w_hh_t = jnp.zeros((Hp, Hp), f32).at[:H, :H].set(w_hh.T.astype(f32))     # (Hp, Hp)
    w_fc_t = jnp.zeros((Hp, Op), f32).at[:H, :O].set(w_fc.T.astype(f32))     # (Hp, Op)

    xpad = jnp.zeros((Bp, T, I), f32).at[:B].set(x)
    h0pad = jnp.zeros((Bp, Hp), f32).at[:B, :H].set(h0)

    # Input projection hoisted out of the serial recurrence: one big matmul,
    # emitted directly in the time-major layout the kernel DMAs.
    xp = jnp.einsum('bti,ih->tbh', xpad, w_ih_t)                             # (T, Bp, Hp)

    TB = _pick_batch_tile(Bp)
    budget, vmem_limit = _vmem_budget()
    TC = _pick_time_chunk(T, TB, Hp, Op, budget)
    Tp = _round_up(T, TC)
    if Tp != T:
        xp = jnp.zeros((Tp, Bp, Hp), f32).at[:T].set(xp)

    # Sub-tile interleave count (sub-tile rows stay a multiple of 8 sublanes).
    if TB >= 64 and TB % 32 == 0:
        n_sub = 4
    elif TB % 16 == 0:
        n_sub = 2
    else:
        n_sub = 1
    unroll = max(1, min(8, TC))

    kernel = functools.partial(rnn_fused_kernel, n_sub=n_sub, unroll=unroll)

    y_pad = pl.pallas_call(
        kernel,
        out_shape=jax.ShapeDtypeStruct((Tp, Bp, Op), f32),
        grid=(Bp // TB, Tp // TC),
        in_specs=[
            pl.BlockSpec((TC, TB, Hp), lambda b, t: (t, b, 0)),   # xp chunk
            pl.BlockSpec((TB, Hp), lambda b, t: (b, 0)),          # h0 (batch tile)
            pl.BlockSpec((Hp, Hp), lambda b, t: (0, 0)),          # W_hh^T (resident)
            pl.BlockSpec((Hp, Op), lambda b, t: (0, 0)),          # W_fc^T (resident)
        ],
        out_specs=pl.BlockSpec((TC, TB, Op), lambda b, t: (t, b, 0)),
        scratch_shapes=[pltpu.VMEM((TB, Hp), f32)],               # h carry
        compiler_params=pltpu.CompilerParams(
            dimension_semantics=("parallel", "arbitrary"),
            vmem_limit_bytes=vmem_limit),
    )(xp, h0pad, w_hh_t.astype(jnp.bfloat16), w_fc_t.astype(jnp.bfloat16))

    # Slice away padding; the remaining (T, B, O) transpose is tiny (O << H).
    return jnp.transpose(y_pad[:T, :B, :O], (1, 0, 2))


def rnn_forward_ref(x, h0, w_ih, w_hh, w_fc):
    """Pure-JAX f32 reference matching torch nn.RNN(batch_first=True, bias=False)
    + Linear(bias=False)."""
    def step(h, x_t):
        h_new = jnp.tanh(x_t @ w_ih.T + h @ w_hh.T)
        return h_new, h_new
    xs = jnp.transpose(x.astype(jnp.float32), (1, 0, 2))        # (T, B, I)
    _, hs = jax.lax.scan(step, h0.astype(jnp.float32), xs)      # (T, B, H)
    y = hs @ w_fc.T                                             # (T, B, O)
    return jnp.transpose(y, (1, 0, 2))                          # (B, T, O)


if __name__ == "__main__":
    # Small shapes consistent with the module's forward.
    B, T = 2, 8
    input_size, hidden_size, output_size = 4, 32, 4

    key = jax.random.PRNGKey(0)
    kx, kh, k1, k2, k3 = jax.random.split(key, 5)

    x = jax.random.normal(kx, (B, T, input_size), dtype=jnp.float32)
    initial_state = jax.random.normal(kh, (B, hidden_size), dtype=jnp.float32)

    # Deterministic parameter init (PyTorch shapes):
    #   rnn.weight_ih_l0 : (hidden, input)
    #   rnn.weight_hh_l0 : (hidden, hidden)
    #   fc.weight        : (output, hidden)
    scale = 1.0 / jnp.sqrt(hidden_size)
    w_ih = jax.random.uniform(k1, (hidden_size, input_size), jnp.float32, -scale, scale)
    w_hh = jax.random.uniform(k2, (hidden_size, hidden_size), jnp.float32, -scale, scale)
    w_fc = jax.random.uniform(k3, (output_size, hidden_size), jnp.float32, -scale, scale)

    y = jax.jit(rnn_forward)(x, initial_state, w_ih, w_hh, w_fc)
    jax.block_until_ready(y)

    y_ref = rnn_forward_ref(x, initial_state, w_ih, w_hh, w_fc)
    assert y.shape == (B, T, output_size)
    # Tolerance loosened vs. f32: the recurrent matmul runs in bf16 on the MXU
    # and its rounding compounds over T steps (carry/tanh stay f32).
    assert jnp.allclose(y, y_ref, atol=5e-2, rtol=5e-2), (
        "mismatch vs reference: max abs diff = "
        f"{float(jnp.max(jnp.abs(y - y_ref)))}")

    print("KERNEL_OK")
</pallas_src>

<mosaic_0001>
module attributes {stable_mosaic.version = 11 : i64} {
  func.func @rnn_fused_kernel(%arg0: i32, %arg1: i32, %arg2: memref<8x16x128xf32, #tpu.memory_space<vmem>>, %arg3: memref<16x128xf32, #tpu.memory_space<vmem>>, %arg4: memref<128x128xbf16, #tpu.memory_space<vmem>>, %arg5: memref<128x128xbf16, #tpu.memory_space<vmem>>, %arg6: memref<8x16x128xf32, #tpu.memory_space<vmem>>, %arg7: memref<16x128xf32, #tpu.memory_space<vmem>>) attributes {dimension_semantics = [#tpu.dimension_semantics<parallel>, #tpu.dimension_semantics<arbitrary>], iteration_bounds = array<i64: 2, 1>, scalar_prefetch = 0 : i64, scratch_operands = 1 : i64, tpu.core_type = #tpu.core_type<tc>, window_params = [{transform_indices = @transform_0, window_bounds = array<i64: 8, 16, 128>}, {transform_indices = @transform_1, window_bounds = array<i64: 16, 128>}, {pipeline_mode = #tpu.pipeline_mode<synchronous>, transform_indices = @transform_2, window_bounds = array<i64: 128, 128>}, {pipeline_mode = #tpu.pipeline_mode<synchronous>, transform_indices = @transform_3, window_bounds = array<i64: 128, 128>}, {transform_indices = @transform_4, window_bounds = array<i64: 8, 16, 128>}]} {
    %c0_i32 = arith.constant 0 : i32
    %0 = arith.cmpi eq, %arg1, %c0_i32 : i32
    %1 = arith.extui %0 : i1 to i32
    %c0_i32_0 = arith.constant 0 : i32
    %2 = arith.cmpi ne, %1, %c0_i32_0 : i32
    scf.if %2 {
      %c0_131 = arith.constant 0 : index
      %c0_132 = arith.constant 0 : index
      %213 = vector.load %arg3[%c0_131, %c0_132] : memref<16x128xf32, #tpu.memory_space<vmem>>, vector<16x128xf32>
      %c0_133 = arith.constant 0 : index
      %c0_134 = arith.constant 0 : index
      %214 = vector.load %arg7[%c0_133, %c0_134] : memref<16x128xf32, #tpu.memory_space<vmem>>, vector<16x128xf32>
      tpu.vector_store %arg7[%c0_133, %c0_134], %213 {strides = array<i32>} : memref<16x128xf32, #tpu.memory_space<vmem>>, vector<16x128xf32>,
    } else {
    }
    %c0 = arith.constant 0 : index
    %c0_1 = arith.constant 0 : index
    %3 = vector.load %arg4[%c0, %c0_1] : memref<128x128xbf16, #tpu.memory_space<vmem>>, vector<128x128xbf16>
    %c0_2 = arith.constant 0 : index
    %c0_3 = arith.constant 0 : index
    %4 = vector.load %arg5[%c0_2, %c0_3] : memref<128x128xbf16, #tpu.memory_space<vmem>>, vector<128x128xbf16>
    %c0_i32_4 = arith.constant 0 : i32
    %5 = arith.index_cast %c0_i32_4 : i32 to index
    %c0_5 = arith.constant 0 : index
    %c0_6 = arith.constant 0 : index
    %6 = vector.load %arg2[%5, %c0_5, %c0_6] : memref<8x16x128xf32, #tpu.memory_space<vmem>>, vector<1x16x128xf32>
    %7 = vector.shape_cast %6 : vector<1x16x128xf32> to vector<16x128xf32>
    %c0_7 = arith.constant 0 : index
    %c0_8 = arith.constant 0 : index
    %8 = vector.load %arg7[%c0_7, %c0_8] : memref<16x128xf32, #tpu.memory_space<vmem>>, vector<8x128xf32>
    %9 = arith.truncf %8 : vector<8x128xf32> to vector<8x128xbf16>
    %10 = vector.extract_strided_slice %7 {offsets = [0, 0], sizes = [8, 128], strides = [1, 1]} : vector<16x128xf32> to vector<8x128xf32>
    %cst = arith.constant dense<0.000000e+00> : vector<8x128xf32>
    %11 = tpu.matmul %9, %3, %cst {dimension_numbers = #tpu.dot_dimension_numbers<[1], [0], [0], [1], [0, 0, 1, 1], [], []>} : vector<8x128xbf16>, vector<128x128xbf16>, vector<8x128xf32> -> vector<8x128xf32>
    %12 = arith.addf %10, %11 : vector<8x128xf32>
    %13 = math.tanh %12 : vector<8x128xf32>
    %c0_9 = arith.constant 0 : index
    %c0_10 = arith.constant 0 : index
    %14 = vector.load %arg7[%c0_9, %c0_10] : memref<16x128xf32, #tpu.memory_space<vmem>>, vector<8x128xf32>
    tpu.vector_store %arg7[%c0_9, %c0_10], %13 {strides = array<i32>} : memref<16x128xf32, #tpu.memory_space<vmem>>, vector<8x128xf32>,
    %15 = arith.truncf %13 : vector<8x128xf32> to vector<8x128xbf16>
    %cst_11 = arith.constant dense<0.000000e+00> : vector<8x128xf32>
    %16 = tpu.matmul %15, %4, %cst_11 {dimension_numbers = #tpu.dot_dimension_numbers<[1], [0], [0], [1], [0, 0, 1, 1], [], []>} : vector<8x128xbf16>, vector<128x128xbf16>, vector<8x128xf32> -> vector<8x128xf32>
    %c8 = arith.constant 8 : index
    %c0_12 = arith.constant 0 : index
    %17 = vector.load %arg7[%c8, %c0_12] : memref<16x128xf32, #tpu.memory_space<vmem>>, vector<8x128xf32>
    %18 = arith.truncf %17 : vector<8x128xf32> to vector<8x128xbf16>
    %19 = vector.extract_strided_slice %7 {offsets = [8, 0], sizes = [8, 128], strides = [1, 1]} : vector<16x128xf32> to vector<8x128xf32>
    %cst_13 = arith.constant dense<0.000000e+00> : vector<8x128xf32>
    %20 = tpu.matmul %18, %3, %cst_13 {dimension_numbers = #tpu.dot_dimension_numbers<[1], [0], [0], [1], [0, 0, 1, 1], [], []>} : vector<8x128xbf16>, vector<128x128xbf16>, vector<8x128xf32> -> vector<8x128xf32>
    %21 = arith.addf %19, %20 : vector<8x128xf32>
    %22 = math.tanh %21 : vector<8x128xf32>
    %c8_14 = arith.constant 8 : index
    %c0_15 = arith.constant 0 : index
    %23 = vector.load %arg7[%c8_14, %c0_15] : memref<16x128xf32, #tpu.memory_space<vmem>>, vector<8x128xf32>
    tpu.vector_store %arg7[%c8_14, %c0_15], %22 {strides = array<i32>} : memref<16x128xf32, #tpu.memory_space<vmem>>, vector<8x128xf32>,
    %24 = arith.truncf %22 : vector<8x128xf32> to vector<8x128xbf16>
    %cst_16 = arith.constant dense<0.000000e+00> : vector<8x128xf32>
    %25 = tpu.matmul %24, %4, %cst_16 {dimension_numbers = #tpu.dot_dimension_numbers<[1], [0], [0], [1], [0, 0, 1, 1], [], []>} : vector<8x128xbf16>, vector<128x128xbf16>, vector<8x128xf32> -> vector<8x128xf32>
    %26 = tpu.concatenate %16, %25 in 0 : vector<8x128xf32>, vector<8x128xf32> -> vector<16x128xf32>
    %27 = arith.index_cast %c0_i32_4 : i32 to index
    %c0_17 = arith.constant 0 : index
    %c0_18 = arith.constant 0 : index
    %28 = vector.load %arg6[%27, %c0_17, %c0_18] : memref<8x16x128xf32, #tpu.memory_space<vmem>>, vector<1x16x128xf32>
    %29 = vector.shape_cast %28 : vector<1x16x128xf32> to vector<16x128xf32>
    %30 = vector.shape_cast %26 : vector<16x128xf32> to vector<1x16x128xf32>
    tpu.vector_store %arg6[%27, %c0_17, %c0_18], %30 {strides = array<i32>} : memref<8x16x128xf32, #tpu.memory_space<vmem>>, vector<1x16x128xf32>,
    %c1_i32 = arith.constant 1 : i32
    %31 = arith.index_cast %c1_i32 : i32 to index
    %c0_19 = arith.constant 0 : index
    %c0_20 = arith.constant 0 : index
    %32 = vector.load %arg2[%31, %c0_19, %c0_20] : memref<8x16x128xf32, #tpu.memory_space<vmem>>, vector<1x16x128xf32>
    %33 = vector.shape_cast %32 : vector<1x16x128xf32> to vector<16x128xf32>
    %c0_21 = arith.constant 0 : index
    %c0_22 = arith.constant 0 : index
    %34 = vector.load %arg7[%c0_21, %c0_22] : memref<16x128xf32, #tpu.memory_space<vmem>>, vector<8x128xf32>
    %35 = arith.truncf %34 : vector<8x128xf32> to vector<8x128xbf16>
    %36 = vector.extract_strided_slice %33 {offsets = [0, 0], sizes = [8, 128], strides = [1, 1]} : vector<16x128xf32> to vector<8x128xf32>
    %cst_23 = arith.constant dense<0.000000e+00> : vector<8x128xf32>
    %37 = tpu.matmul %35, %3, %cst_23 {dimension_numbers = #tpu.dot_dimension_numbers<[1], [0], [0], [1], [0, 0, 1, 1], [], []>} : vector<8x128xbf16>, vector<128x128xbf16>, vector<8x128xf32> -> vector<8x128xf32>
    %38 = arith.addf %36, %37 : vector<8x128xf32>
    %39 = math.tanh %38 : vector<8x128xf32>
    %c0_24 = arith.constant 0 : index
    %c0_25 = arith.constant 0 : index
    %40 = vector.load %arg7[%c0_24, %c0_25] : memref<16x128xf32, #tpu.memory_space<vmem>>, vector<8x128xf32>
    tpu.vector_store %arg7[%c0_24, %c0_25], %39 {strides = array<i32>} : memref<16x128xf32, #tpu.memory_space<vmem>>, vector<8x128xf32>,
    %41 = arith.truncf %39 : vector<8x128xf32> to vector<8x128xbf16>
    %cst_26 = arith.constant dense<0.000000e+00> : vector<8x128xf32>
    %42 = tpu.matmul %41, %4, %cst_26 {dimension_numbers = #tpu.dot_dimension_numbers<[1], [0], [0], [1], [0, 0, 1, 1], [], []>} : vector<8x128xbf16>, vector<128x128xbf16>, vector<8x128xf32> -> vector<8x128xf32>
    %c8_27 = arith.constant 8 : index
    %c0_28 = arith.constant 0 : index
    %43 = vector.load %arg7[%c8_27, %c0_28] : memref<16x128xf32, #tpu.memory_space<vmem>>, vector<8x128xf32>
    %44 = arith.truncf %43 : vector<8x128xf32> to vector<8x128xbf16>
    %45 = vector.extract_strided_slice %33 {offsets = [8, 0], sizes = [8, 128], strides = [1, 1]} : vector<16x128xf32> to vector<8x128xf32>
    %cst_29 = arith.constant dense<0.000000e+00> : vector<8x128xf32>
    %46 = tpu.matmul %44, %3, %cst_29 {dimension_numbers = #tpu.dot_dimension_numbers<[1], [0], [0], [1], [0, 0, 1, 1], [], []>} : vector<8x128xbf16>, vector<128x128xbf16>, vector<8x128xf32> -> vector<8x128xf32>
    %47 = arith.addf %45, %46 : vector<8x128xf32>
    %48 = math.tanh %47 : vector<8x128xf32>
    %c8_30 = arith.constant 8 : index
    %c0_31 = arith.constant 0 : index
    %49 = vector.load %arg7[%c8_30, %c0_31] : memref<16x128xf32, #tpu.memory_space<vmem>>, vector<8x128xf32>
    tpu.vector_store %arg7[%c8_30, %c0_31], %48 {strides = array<i32>} : memref<16x128xf32, #tpu.memory_space<vmem>>, vector<8x128xf32>,
    %50 = arith.truncf %48 : vector<8x128xf32> to vector<8x128xbf16>
    %cst_32 = arith.constant dense<0.000000e+00> : vector<8x128xf32>
    %51 = tpu.matmul %50, %4, %cst_32 {dimension_numbers = #tpu.dot_dimension_numbers<[1], [0], [0], [1], [0, 0, 1, 1], [], []>} : vector<8x128xbf16>, vector<128x128xbf16>, vector<8x128xf32> -> vector<8x128xf32>
    %52 = tpu.concatenate %42, %51 in 0 : vector<8x128xf32>, vector<8x128xf32> -> vector<16x128xf32>
    %53 = arith.index_cast %c1_i32 : i32 to index
    %c0_33 = arith.constant 0 : index
    %c0_34 = arith.constant 0 : index
    %54 = vector.load %arg6[%53, %c0_33, %c0_34] : memref<8x16x128xf32, #tpu.memory_space<vmem>>, vector<1x16x128xf32>
    %55 = vector.shape_cast %54 : vector<1x16x128xf32> to vector<16x128xf32>
    %56 = vector.shape_cast %52 : vector<16x128xf32> to vector<1x16x128xf32>
    tpu.vector_store %arg6[%53, %c0_33, %c0_34], %56 {strides = array<i32>} : memref<8x16x128xf32, #tpu.memory_space<vmem>>, vector<1x16x128xf32>,
    %c2_i32 = arith.constant 2 : i32
    %57 = arith.index_cast %c2_i32 : i32 to index
    %c0_35 = arith.constant 0 : index
    %c0_36 = arith.constant 0 : index
    %58 = vector.load %arg2[%57, %c0_35, %c0_36] : memref<8x16x128xf32, #tpu.memory_space<vmem>>, vector<1x16x128xf32>
    %59 = vector.shape_cast %58 : vector<1x16x128xf32> to vector<16x128xf32>
    %c0_37 = arith.constant 0 : index
    %c0_38 = arith.constant 0 : index
    %60 = vector.load %arg7[%c0_37, %c0_38] : memref<16x128xf32, #tpu.memory_space<vmem>>, vector<8x128xf32>
    %61 = arith.truncf %60 : vector<8x128xf32> to vector<8x128xbf16>
    %62 = vector.extract_strided_slice %59 {offsets = [0, 0], sizes = [8, 128], strides = [1, 1]} : vector<16x128xf32> to vector<8x128xf32>
    %cst_39 = arith.constant dense<0.000000e+00> : vector<8x128xf32>
    %63 = tpu.matmul %61, %3, %cst_39 {dimension_numbers = #tpu.dot_dimension_numbers<[1], [0], [0], [1], [0, 0, 1, 1], [], []>} : vector<8x128xbf16>, vector<128x128xbf16>, vector<8x128xf32> -> vector<8x128xf32>
    %64 = arith.addf %62, %63 : vector<8x128xf32>
    %65 = math.tanh %64 : vector<8x128xf32>
    %c0_40 = arith.constant 0 : index
    %c0_41 = arith.constant 0 : index
    %66 = vector.load %arg7[%c0_40, %c0_41] : memref<16x128xf32, #tpu.memory_space<vmem>>, vector<8x128xf32>
    tpu.vector_store %arg7[%c0_40, %c0_41], %65 {strides = array<i32>} : memref<16x128xf32, #tpu.memory_space<vmem>>, vector<8x128xf32>,
    %67 = arith.truncf %65 : vector<8x128xf32> to vector<8x128xbf16>
    %cst_42 = arith.constant dense<0.000000e+00> : vector<8x128xf32>
    %68 = tpu.matmul %67, %4, %cst_42 {dimension_numbers = #tpu.dot_dimension_numbers<[1], [0], [0], [1], [0, 0, 1, 1], [], []>} : vector<8x128xbf16>, vector<128x128xbf16>, vector<8x128xf32> -> vector<8x128xf32>
    %c8_43 = arith.constant 8 : index
    %c0_44 = arith.constant 0 : index
    %69 = vector.load %arg7[%c8_43, %c0_44] : memref<16x128xf32, #tpu.memory_space<vmem>>, vector<8x128xf32>
    %70 = arith.truncf %69 : vector<8x128xf32> to vector<8x128xbf16>
    %71 = vector.extract_strided_slice %59 {offsets = [8, 0], sizes = [8, 128], strides = [1, 1]} : vector<16x128xf32> to vector<8x128xf32>
    %cst_45 = arith.constant dense<0.000000e+00> : vector<8x128xf32>
    %72 = tpu.matmul %70, %3, %cst_45 {dimension_numbers = #tpu.dot_dimension_numbers<[1], [0], [0], [1], [0, 0, 1, 1], [], []>} : vector<8x128xbf16>, vector<128x128xbf16>, vector<8x128xf32> -> vector<8x128xf32>
    %73 = arith.addf %71, %72 : vector<8x128xf32>
    %74 = math.tanh %73 : vector<8x128xf32>
    %c8_46 = arith.constant 8 : index
    %c0_47 = arith.constant 0 : index
    %75 = vector.load %arg7[%c8_46, %c0_47] : memref<16x128xf32, #tpu.memory_space<vmem>>, vector<8x128xf32>
    tpu.vector_store %arg7[%c8_46, %c0_47], %74 {strides = array<i32>} : memref<16x128xf32, #tpu.memory_space<vmem>>, vector<8x128xf32>,
    %76 = arith.truncf %74 : vector<8x128xf32> to vector<8x128xbf16>
    %cst_48 = arith.constant dense<0.000000e+00> : vector<8x128xf32>
    %77 = tpu.matmul %76, %4, %cst_48 {dimension_numbers = #tpu.dot_dimension_numbers<[1], [0], [0], [1], [0, 0, 1, 1], [], []>} : vector<8x128xbf16>, vector<128x128xbf16>, vector<8x128xf32> -> vector<8x128xf32>
    %78 = tpu.concatenate %68, %77 in 0 : vector<8x128xf32>, vector<8x128xf32> -> vector<16x128xf32>
    %79 = arith.index_cast %c2_i32 : i32 to index
    %c0_49 = arith.constant 0 : index
    %c0_50 = arith.constant 0 : index
    %80 = vector.load %arg6[%79, %c0_49, %c0_50] : memref<8x16x128xf32, #tpu.memory_space<vmem>>, vector<1x16x128xf32>
    %81 = vector.shape_cast %80 : vector<1x16x128xf32> to vector<16x128xf32>
    %82 = vector.shape_cast %78 : vector<16x128xf32> to vector<1x16x128xf32>
    tpu.vector_store %arg6[%79, %c0_49, %c0_50], %82 {strides = array<i32>} : memref<8x16x128xf32, #tpu.memory_space<vmem>>, vector<1x16x128xf32>,
    %c3_i32 = arith.constant 3 : i32
    %83 = arith.index_cast %c3_i32 : i32 to index
    %c0_51 = arith.constant 0 : index
    %c0_52 = arith.constant 0 : index
    %84 = vector.load %arg2[%83, %c0_51, %c0_52] : memref<8x16x128xf32, #tpu.memory_space<vmem>>, vector<1x16x128xf32>
    %85 = vector.shape_cast %84 : vector<1x16x128xf32> to vector<16x128xf32>
    %c0_53 = arith.constant 0 : index
    %c0_54 = arith.constant 0 : index
    %86 = vector.load %arg7[%c0_53, %c0_54] : memref<16x128xf32, #tpu.memory_space<vmem>>, vector<8x128xf32>
    %87 = arith.truncf %86 : vector<8x128xf32> to vector<8x128xbf16>
    %88 = vector.extract_strided_slice %85 {offsets = [0, 0], sizes = [8, 128], strides = [1, 1]} : vector<16x128xf32> to vector<8x128xf32>
    %cst_55 = arith.constant dense<0.000000e+00> : vector<8x128xf32>
    %89 = tpu.matmul %87, %3, %cst_55 {dimension_numbers = #tpu.dot_dimension_numbers<[1], [0], [0], [1], [0, 0, 1, 1], [], []>} : vector<8x128xbf16>, vector<128x128xbf16>, vector<8x128xf32> -> vector<8x128xf32>
    %90 = arith.addf %88, %89 : vector<8x128xf32>
    %91 = math.tanh %90 : vector<8x128xf32>
    %c0_56 = arith.constant 0 : index
    %c0_57 = arith.constant 0 : index
    %92 = vector.load %arg7[%c0_56, %c0_57] : memref<16x128xf32, #tpu.memory_space<vmem>>, vector<8x128xf32>
    tpu.vector_store %arg7[%c0_56, %c0_57], %91 {strides = array<i32>} : memref<16x128xf32, #tpu.memory_space<vmem>>, vector<8x128xf32>,
    %93 = arith.truncf %91 : vector<8x128xf32> to vector<8x128xbf16>
    %cst_58 = arith.constant dense<0.000000e+00> : vector<8x128xf32>
    %94 = tpu.matmul %93, %4, %cst_58 {dimension_numbers = #tpu.dot_dimension_numbers<[1], [0], [0], [1], [0, 0, 1, 1], [], []>} : vector<8x128xbf16>, vector<128x128xbf16>, vector<8x128xf32> -> vector<8x128xf32>
    %c8_59 = arith.constant 8 : index
    %c0_60 = arith.constant 0 : index
    %95 = vector.load %arg7[%c8_59, %c0_60] : memref<16x128xf32, #tpu.memory_space<vmem>>, vector<8x128xf32>
    %96 = arith.truncf %95 : vector<8x128xf32> to vector<8x128xbf16>
    %97 = vector.extract_strided_slice %85 {offsets = [8, 0], sizes = [8, 128], strides = [1, 1]} : vector<16x128xf32> to vector<8x128xf32>
    %cst_61 = arith.constant dense<0.000000e+00> : vector<8x128xf32>
    %98 = tpu.matmul %96, %3, %cst_61 {dimension_numbers = #tpu.dot_dimension_numbers<[1], [0], [0], [1], [0, 0, 1, 1], [], []>} : vector<8x128xbf16>, vector<128x128xbf16>, vector<8x128xf32> -> vector<8x128xf32>
    %99 = arith.addf %97, %98 : vector<8x128xf32>
    %100 = math.tanh %99 : vector<8x128xf32>
    %c8_62 = arith.constant 8 : index
    %c0_63 = arith.constant 0 : index
    %101 = vector.load %arg7[%c8_62, %c0_63] : memref<16x128xf32, #tpu.memory_space<vmem>>, vector<8x128xf32>
    tpu.vector_store %arg7[%c8_62, %c0_63], %100 {strides = array<i32>} : memref<16x128xf32, #tpu.memory_space<vmem>>, vector<8x128xf32>,
    %102 = arith.truncf %100 : vector<8x128xf32> to vector<8x128xbf16>
    %cst_64 = arith.constant dense<0.000000e+00> : vector<8x128xf32>
    %103 = tpu.matmul %102, %4, %cst_64 {dimension_numbers = #tpu.dot_dimension_numbers<[1], [0], [0], [1], [0, 0, 1, 1], [], []>} : vector<8x128xbf16>, vector<128x128xbf16>, vector<8x128xf32> -> vector<8x128xf32>
    %104 = tpu.concatenate %94, %103 in 0 : vector<8x128xf32>, vector<8x128xf32> -> vector<16x128xf32>
    %105 = arith.index_cast %c3_i32 : i32 to index
    %c0_65 = arith.constant 0 : index
    %c0_66 = arith.constant 0 : index
    %106 = vector.load %arg6[%105, %c0_65, %c0_66] : memref<8x16x128xf32, #tpu.memory_space<vmem>>, vector<1x16x128xf32>
    %107 = vector.shape_cast %106 : vector<1x16x128xf32> to vector<16x128xf32>
    %108 = vector.shape_cast %104 : vector<16x128xf32> to vector<1x16x128xf32>
    tpu.vector_store %arg6[%105, %c0_65, %c0_66], %108 {strides = array<i32>} : memref<8x16x128xf32, #tpu.memory_space<vmem>>, vector<1x16x128xf32>,
    %c4_i32 = arith.constant 4 : i32
    %109 = arith.index_cast %c4_i32 : i32 to index
    %c0_67 = arith.constant 0 : index
    %c0_68 = arith.constant 0 : index
    %110 = vector.load %arg2[%109, %c0_67, %c0_68] : memref<8x16x128xf32, #tpu.memory_space<vmem>>, vector<1x16x128xf32>
    %111 = vector.shape_cast %110 : vector<1x16x128xf32> to vector<16x128xf32>
    %c0_69 = arith.constant 0 : index
    %c0_70 = arith.constant 0 : index
    %112 = vector.load %arg7[%c0_69, %c0_70] : memref<16x128xf32, #tpu.memory_space<vmem>>, vector<8x128xf32>
    %113 = arith.truncf %112 : vector<8x128xf32> to vector<8x128xbf16>
    %114 = vector.extract_strided_slice %111 {offsets = [0, 0], sizes = [8, 128], strides = [1, 1]} : vector<16x128xf32> to vector<8x128xf32>
    %cst_71 = arith.constant dense<0.000000e+00> : vector<8x128xf32>
    %115 = tpu.matmul %113, %3, %cst_71 {dimension_numbers = #tpu.dot_dimension_numbers<[1], [0], [0], [1], [0, 0, 1, 1], [], []>} : vector<8x128xbf16>, vector<128x128xbf16>, vector<8x128xf32> -> vector<8x128xf32>
    %116 = arith.addf %114, %115 : vector<8x128xf32>
    %117 = math.tanh %116 : vector<8x128xf32>
    %c0_72 = arith.constant 0 : index
    %c0_73 = arith.constant 0 : index
    %118 = vector.load %arg7[%c0_72, %c0_73] : memref<16x128xf32, #tpu.memory_space<vmem>>, vector<8x128xf32>
    tpu.vector_store %arg7[%c0_72, %c0_73], %117 {strides = array<i32>} : memref<16x128xf32, #tpu.memory_space<vmem>>, vector<8x128xf32>,
    %119 = arith.truncf %117 : vector<8x128xf32> to vector<8x128xbf16>
    %cst_74 = arith.constant dense<0.000000e+00> : vector<8x128xf32>
    %120 = tpu.matmul %119, %4, %cst_74 {dimension_numbers = #tpu.dot_dimension_numbers<[1], [0], [0], [1], [0, 0, 1, 1], [], []>} : vector<8x128xbf16>, vector<128x128xbf16>, vector<8x128xf32> -> vector<8x128xf32>
    %c8_75 = arith.constant 8 : index
    %c0_76 = arith.constant 0 : index
    %121 = vector.load %arg7[%c8_75, %c0_76] : memref<16x128xf32, #tpu.memory_space<vmem>>, vector<8x128xf32>
    %122 = arith.truncf %121 : vector<8x128xf32> to vector<8x128xbf16>
    %123 = vector.extract_strided_slice %111 {offsets = [8, 0], sizes = [8, 128], strides = [1, 1]} : vector<16x128xf32> to vector<8x128xf32>
    %cst_77 = arith.constant dense<0.000000e+00> : vector<8x128xf32>
    %124 = tpu.matmul %122, %3, %cst_77 {dimension_numbers = #tpu.dot_dimension_numbers<[1], [0], [0], [1], [0, 0, 1, 1], [], []>} : vector<8x128xbf16>, vector<128x128xbf16>, vector<8x128xf32> -> vector<8x128xf32>
    %125 = arith.addf %123, %124 : vector<8x128xf32>
    %126 = math.tanh %125 : vector<8x128xf32>
    %c8_78 = arith.constant 8 : index
    %c0_79 = arith.constant 0 : index
    %127 = vector.load %arg7[%c8_78, %c0_79] : memref<16x128xf32, #tpu.memory_space<vmem>>, vector<8x128xf32>
    tpu.vector_store %arg7[%c8_78, %c0_79], %126 {strides = array<i32>} : memref<16x128xf32, #tpu.memory_space<vmem>>, vector<8x128xf32>,
    %128 = arith.truncf %126 : vector<8x128xf32> to vector<8x128xbf16>
    %cst_80 = arith.constant dense<0.000000e+00> : vector<8x128xf32>
    %129 = tpu.matmul %128, %4, %cst_80 {dimension_numbers = #tpu.dot_dimension_numbers<[1], [0], [0], [1], [0, 0, 1, 1], [], []>} : vector<8x128xbf16>, vector<128x128xbf16>, vector<8x128xf32> -> vector<8x128xf32>
    %130 = tpu.concatenate %120, %129 in 0 : vector<8x128xf32>, vector<8x128xf32> -> vector<16x128xf32>
    %131 = arith.index_cast %c4_i32 : i32 to index
    %c0_81 = arith.constant 0 : index
    %c0_82 = arith.constant 0 : index
    %132 = vector.load %arg6[%131, %c0_81, %c0_82] : memref<8x16x128xf32, #tpu.memory_space<vmem>>, vector<1x16x128xf32>
    %133 = vector.shape_cast %132 : vector<1x16x128xf32> to vector<16x128xf32>
    %134 = vector.shape_cast %130 : vector<16x128xf32> to vector<1x16x128xf32>
    tpu.vector_store %arg6[%131, %c0_81, %c0_82], %134 {strides = array<i32>} : memref<8x16x128xf32, #tpu.memory_space<vmem>>, vector<1x16x128xf32>,
    %c5_i32 = arith.constant 5 : i32
    %135 = arith.index_cast %c5_i32 : i32 to index
    %c0_83 = arith.constant 0 : index
    %c0_84 = arith.constant 0 : index
    %136 = vector.load %arg2[%135, %c0_83, %c0_84] : memref<8x16x128xf32, #tpu.memory_space<vmem>>, vector<1x16x128xf32>
    %137 = vector.shape_cast %136 : vector<1x16x128xf32> to vector<16x128xf32>
    %c0_85 = arith.constant 0 : index
    %c0_86 = arith.constant 0 : index
    %138 = vector.load %arg7[%c0_85, %c0_86] : memref<16x128xf32, #tpu.memory_space<vmem>>, vector<8x128xf32>
    %139 = arith.truncf %138 : vector<8x128xf32> to vector<8x128xbf16>
    %140 = vector.extract_strided_slice %137 {offsets = [0, 0], sizes = [8, 128], strides = [1, 1]} : vector<16x128xf32> to vector<8x128xf32>
    %cst_87 = arith.constant dense<0.000000e+00> : vector<8x128xf32>
    %141 = tpu.matmul %139, %3, %cst_87 {dimension_numbers = #tpu.dot_dimension_numbers<[1], [0], [0], [1], [0, 0, 1, 1], [], []>} : vector<8x128xbf16>, vector<128x128xbf16>, vector<8x128xf32> -> vector<8x128xf32>
    %142 = arith.addf %140, %141 : vector<8x128xf32>
    %143 = math.tanh %142 : vector<8x128xf32>
    %c0_88 = arith.constant 0 : index
    %c0_89 = arith.constant 0 : index
    %144 = vector.load %arg7[%c0_88, %c0_89] : memref<16x128xf32, #tpu.memory_space<vmem>>, vector<8x128xf32>
    tpu.vector_store %arg7[%c0_88, %c0_89], %143 {strides = array<i32>} : memref<16x128xf32, #tpu.memory_space<vmem>>, vector<8x128xf32>,
    %145 = arith.truncf %143 : vector<8x128xf32> to vector<8x128xbf16>
    %cst_90 = arith.constant dense<0.000000e+00> : vector<8x128xf32>
    %146 = tpu.matmul %145, %4, %cst_90 {dimension_numbers = #tpu.dot_dimension_numbers<[1], [0], [0], [1], [0, 0, 1, 1], [], []>} : vector<8x128xbf16>, vector<128x128xbf16>, vector<8x128xf32> -> vector<8x128xf32>
    %c8_91 = arith.constant 8 : index
    %c0_92 = arith.constant 0 : index
    %147 = vector.load %arg7[%c8_91, %c0_92] : memref<16x128xf32, #tpu.memory_space<vmem>>, vector<8x128xf32>
    %148 = arith.truncf %147 : vector<8x128xf32> to vector<8x128xbf16>
    %149 = vector.extract_strided_slice %137 {offsets = [8, 0], sizes = [8, 128], strides = [1, 1]} : vector<16x128xf32> to vector<8x128xf32>
    %cst_93 = arith.constant dense<0.000000e+00> : vector<8x128xf32>
    %150 = tpu.matmul %148, %3, %cst_93 {dimension_numbers = #tpu.dot_dimension_numbers<[1], [0], [0], [1], [0, 0, 1, 1], [], []>} : vector<8x128xbf16>, vector<128x128xbf16>, vector<8x128xf32> -> vector<8x128xf32>
    %151 = arith.addf %149, %150 : vector<8x128xf32>
    %152 = math.tanh %151 : vector<8x128xf32>
    %c8_94 = arith.constant 8 : index
    %c0_95 = arith.constant 0 : index
    %153 = vector.load %arg7[%c8_94, %c0_95] : memref<16x128xf32, #tpu.memory_space<vmem>>, vector<8x128xf32>
    tpu.vector_store %arg7[%c8_94, %c0_95], %152 {strides = array<i32>} : memref<16x128xf32, #tpu.memory_space<vmem>>, vector<8x128xf32>,
    %154 = arith.truncf %152 : vector<8x128xf32> to vector<8x128xbf16>
    %cst_96 = arith.constant dense<0.000000e+00> : vector<8x128xf32>
    %155 = tpu.matmul %154, %4, %cst_96 {dimension_numbers = #tpu.dot_dimension_numbers<[1], [0], [0], [1], [0, 0, 1, 1], [], []>} : vector<8x128xbf16>, vector<128x128xbf16>, vector<8x128xf32> -> vector<8x128xf32>
    %156 = tpu.concatenate %146, %155 in 0 : vector<8x128xf32>, vector<8x128xf32> -> vector<16x128xf32>
    %157 = arith.index_cast %c5_i32 : i32 to index
    %c0_97 = arith.constant 0 : index
    %c0_98 = arith.constant 0 : index
    %158 = vector.load %arg6[%157, %c0_97, %c0_98] : memref<8x16x128xf32, #tpu.memory_space<vmem>>, vector<1x16x128xf32>
    %159 = vector.shape_cast %158 : vector<1x16x128xf32> to vector<16x128xf32>
    %160 = vector.shape_cast %156 : vector<16x128xf32> to vector<1x16x128xf32>
    tpu.vector_store %arg6[%157, %c0_97, %c0_98], %160 {strides = array<i32>} : memref<8x16x128xf32, #tpu.memory_space<vmem>>, vector<1x16x128xf32>,
    %c6_i32 = arith.constant 6 : i32
    %161 = arith.index_cast %c6_i32 : i32 to index
    %c0_99 = arith.constant 0 : index
    %c0_100 = arith.constant 0 : index
    %162 = vector.load %arg2[%161, %c0_99, %c0_100] : memref<8x16x128xf32, #tpu.memory_space<vmem>>, vector<1x16x128xf32>
    %163 = vector.shape_cast %162 : vector<1x16x128xf32> to vector<16x128xf32>
    %c0_101 = arith.constant 0 : index
    %c0_102 = arith.constant 0 : index
    %164 = vector.load %arg7[%c0_101, %c0_102] : memref<16x128xf32, #tpu.memory_space<vmem>>, vector<8x128xf32>
    %165 = arith.truncf %164 : vector<8x128xf32> to vector<8x128xbf16>
    %166 = vector.extract_strided_slice %163 {offsets = [0, 0], sizes = [8, 128], strides = [1, 1]} : vector<16x128xf32> to vector<8x128xf32>
    %cst_103 = arith.constant dense<0.000000e+00> : vector<8x128xf32>
    %167 = tpu.matmul %165, %3, %cst_103 {dimension_numbers = #tpu.dot_dimension_numbers<[1], [0], [0], [1], [0, 0, 1, 1], [], []>} : vector<8x128xbf16>, vector<128x128xbf16>, vector<8x128xf32> -> vector<8x128xf32>
    %168 = arith.addf %166, %167 : vector<8x128xf32>
    %169 = math.tanh %168 : vector<8x128xf32>
    %c0_104 = arith.constant 0 : index
    %c0_105 = arith.constant 0 : index
    %170 = vector.load %arg7[%c0_104, %c0_105] : memref<16x128xf32, #tpu.memory_space<vmem>>, vector<8x128xf32>
    tpu.vector_store %arg7[%c0_104, %c0_105], %169 {strides = array<i32>} : memref<16x128xf32, #tpu.memory_space<vmem>>, vector<8x128xf32>,
    %171 = arith.truncf %169 : vector<8x128xf32> to vector<8x128xbf16>
    %cst_106 = arith.constant dense<0.000000e+00> : vector<8x128xf32>
    %172 = tpu.matmul %171, %4, %cst_106 {dimension_numbers = #tpu.dot_dimension_numbers<[1], [0], [0], [1], [0, 0, 1, 1], [], []>} : vector<8x128xbf16>, vector<128x128xbf16>, vector<8x128xf32> -> vector<8x128xf32>
    %c8_107 = arith.constant 8 : index
    %c0_108 = arith.constant 0 : index
    %173 = vector.load %arg7[%c8_107, %c0_108] : memref<16x128xf32, #tpu.memory_space<vmem>>, vector<8x128xf32>
    %174 = arith.truncf %173 : vector<8x128xf32> to vector<8x128xbf16>
    %175 = vector.extract_strided_slice %163 {offsets = [8, 0], sizes = [8, 128], strides = [1, 1]} : vector<16x128xf32> to vector<8x128xf32>
    %cst_109 = arith.constant dense<0.000000e+00> : vector<8x128xf32>
    %176 = tpu.matmul %174, %3, %cst_109 {dimension_numbers = #tpu.dot_dimension_numbers<[1], [0], [0], [1], [0, 0, 1, 1], [], []>} : vector<8x128xbf16>, vector<128x128xbf16>, vector<8x128xf32> -> vector<8x128xf32>
    %177 = arith.addf %175, %176 : vector<8x128xf32>
    %178 = math.tanh %177 : vector<8x128xf32>
    %c8_110 = arith.constant 8 : index
    %c0_111 = arith.constant 0 : index
    %179 = vector.load %arg7[%c8_110, %c0_111] : memref<16x128xf32, #tpu.memory_space<vmem>>, vector<8x128xf32>
    tpu.vector_store %arg7[%c8_110, %c0_111], %178 {strides = array<i32>} : memref<16x128xf32, #tpu.memory_space<vmem>>, vector<8x128xf32>,
    %180 = arith.truncf %178 : vector<8x128xf32> to vector<8x128xbf16>
    %cst_112 = arith.constant dense<0.000000e+00> : vector<8x128xf32>
    %181 = tpu.matmul %180, %4, %cst_112 {dimension_numbers = #tpu.dot_dimension_numbers<[1], [0], [0], [1], [0, 0, 1, 1], [], []>} : vector<8x128xbf16>, vector<128x128xbf16>, vector<8x128xf32> -> vector<8x128xf32>
    %182 = tpu.concatenate %172, %181 in 0 : vector<8x128xf32>, vector<8x128xf32> -> vector<16x128xf32>
    %183 = arith.index_cast %c6_i32 : i32 to index
    %c0_113 = arith.constant 0 : index
    %c0_114 = arith.constant 0 : index
    %184 = vector.load %arg6[%183, %c0_113, %c0_114] : memref<8x16x128xf32, #tpu.memory_space<vmem>>, vector<1x16x128xf32>
    %185 = vector.shape_cast %184 : vector<1x16x128xf32> to vector<16x128xf32>
    %186 = vector.shape_cast %182 : vector<16x128xf32> to vector<1x16x128xf32>
    tpu.vector_store %arg6[%183, %c0_113, %c0_114], %186 {strides = array<i32>} : memref<8x16x128xf32, #tpu.memory_space<vmem>>, vector<1x16x128xf32>,
    %c7_i32 = arith.constant 7 : i32
    %187 = arith.index_cast %c7_i32 : i32 to index
    %c0_115 = arith.constant 0 : index
    %c0_116 = arith.constant 0 : index
    %188 = vector.load %arg2[%187, %c0_115, %c0_116] : memref<8x16x128xf32, #tpu.memory_space<vmem>>, vector<1x16x128xf32>
    %189 = vector.shape_cast %188 : vector<1x16x128xf32> to vector<16x128xf32>
    %c0_117 = arith.constant 0 : index
    %c0_118 = arith.constant 0 : index
    %190 = vector.load %arg7[%c0_117, %c0_118] : memref<16x128xf32, #tpu.memory_space<vmem>>, vector<8x128xf32>
    %191 = arith.truncf %190 : vector<8x128xf32> to vector<8x128xbf16>
    %192 = vector.extract_strided_slice %189 {offsets = [0, 0], sizes = [8, 128], strides = [1, 1]} : vector<16x128xf32> to vector<8x128xf32>
    %cst_119 = arith.constant dense<0.000000e+00> : vector<8x128xf32>
    %193 = tpu.matmul %191, %3, %cst_119 {dimension_numbers = #tpu.dot_dimension_numbers<[1], [0], [0], [1], [0, 0, 1, 1], [], []>} : vector<8x128xbf16>, vector<128x128xbf16>, vector<8x128xf32> -> vector<8x128xf32>
    %194 = arith.addf %192, %193 : vector<8x128xf32>
    %195 = math.tanh %194 : vector<8x128xf32>
    %c0_120 = arith.constant 0 : index
    %c0_121 = arith.constant 0 : index
    %196 = vector.load %arg7[%c0_120, %c0_121] : memref<16x128xf32, #tpu.memory_space<vmem>>, vector<8x128xf32>
    tpu.vector_store %arg7[%c0_120, %c0_121], %195 {strides = array<i32>} : memref<16x128xf32, #tpu.memory_space<vmem>>, vector<8x128xf32>,
    %197 = arith.truncf %195 : vector<8x128xf32> to vector<8x128xbf16>
    %cst_122 = arith.constant dense<0.000000e+00> : vector<8x128xf32>
    %198 = tpu.matmul %197, %4, %cst_122 {dimension_numbers = #tpu.dot_dimension_numbers<[1], [0], [0], [1], [0, 0, 1, 1], [], []>} : vector<8x128xbf16>, vector<128x128xbf16>, vector<8x128xf32> -> vector<8x128xf32>
    %c8_123 = arith.constant 8 : index
    %c0_124 = arith.constant 0 : index
    %199 = vector.load %arg7[%c8_123, %c0_124] : memref<16x128xf32, #tpu.memory_space<vmem>>, vector<8x128xf32>
    %200 = arith.truncf %199 : vector<8x128xf32> to vector<8x128xbf16>
    %201 = vector.extract_strided_slice %189 {offsets = [8, 0], sizes = [8, 128], strides = [1, 1]} : vector<16x128xf32> to vector<8x128xf32>
    %cst_125 = arith.constant dense<0.000000e+00> : vector<8x128xf32>
    %202 = tpu.matmul %200, %3, %cst_125 {dimension_numbers = #tpu.dot_dimension_numbers<[1], [0], [0], [1], [0, 0, 1, 1], [], []>} : vector<8x128xbf16>, vector<128x128xbf16>, vector<8x128xf32> -> vector<8x128xf32>
    %203 = arith.addf %201, %202 : vector<8x128xf32>
    %204 = math.tanh %203 : vector<8x128xf32>
    %c8_126 = arith.constant 8 : index
    %c0_127 = arith.constant 0 : index
    %205 = vector.load %arg7[%c8_126, %c0_127] : memref<16x128xf32, #tpu.memory_space<vmem>>, vector<8x128xf32>
    tpu.vector_store %arg7[%c8_126, %c0_127], %204 {strides = array<i32>} : memref<16x128xf32, #tpu.memory_space<vmem>>, vector<8x128xf32>,
    %206 = arith.truncf %204 : vector<8x128xf32> to vector<8x128xbf16>
    %cst_128 = arith.constant dense<0.000000e+00> : vector<8x128xf32>
    %207 = tpu.matmul %206, %4, %cst_128 {dimension_numbers = #tpu.dot_dimension_numbers<[1], [0], [0], [1], [0, 0, 1, 1], [], []>} : vector<8x128xbf16>, vector<128x128xbf16>, vector<8x128xf32> -> vector<8x128xf32>
    %208 = tpu.concatenate %198, %207 in 0 : vector<8x128xf32>, vector<8x128xf32> -> vector<16x128xf32>
    %209 = arith.index_cast %c7_i32 : i32 to index
    %c0_129 = arith.constant 0 : index
    %c0_130 = arith.constant 0 : index
    %210 = vector.load %arg6[%209, %c0_129, %c0_130] : memref<8x16x128xf32, #tpu.memory_space<vmem>>, vector<1x16x128xf32>
    %211 = vector.shape_cast %210 : vector<1x16x128xf32> to vector<16x128xf32>
    %212 = vector.shape_cast %208 : vector<16x128xf32> to vector<1x16x128xf32>
    tpu.vector_store %arg6[%209, %c0_129, %c0_130], %212 {strides = array<i32>} : memref<8x16x128xf32, #tpu.memory_space<vmem>>, vector<1x16x128xf32>,
    %c8_i32 = arith.constant 8 : i32
    return
  }
  func.func @transform_0(%arg0: i32, %arg1: i32) -> (i32, i32, i32) {
    %c0_i32 = arith.constant 0 : i32
    %c0_i32_0 = arith.constant 0 : i32
    return %arg1, %arg0, %c0_i32 : i32, i32, i32
  }
  func.func @transform_1(%arg0: i32, %arg1: i32) -> (i32, i32) {
    %c0_i32 = arith.constant 0 : i32
    %c0_i32_0 = arith.constant 0 : i32
    return %arg0, %c0_i32 : i32, i32
  }
  func.func @transform_2(%arg0: i32, %arg1: i32) -> (i32, i32) {
    %c0_i32 = arith.constant 0 : i32
    %c0_i32_0 = arith.constant 0 : i32
    %c0_i32_1 = arith.constant 0 : i32
    return %c0_i32, %c0_i32_0 : i32, i32
  }
  func.func @transform_3(%arg0: i32, %arg1: i32) -> (i32, i32) {
    %c0_i32 = arith.constant 0 : i32
    %c0_i32_0 = arith.constant 0 : i32
    %c0_i32_1 = arith.constant 0 : i32
    return %c0_i32, %c0_i32_0 : i32, i32
  }
  func.func @transform_4(%arg0: i32, %arg1: i32) -> (i32, i32, i32) {
    %c0_i32 = arith.constant 0 : i32
    %c0_i32_0 = arith.constant 0 : i32
    return %arg1, %arg0, %c0_i32 : i32, i32, i32
  }
}

</mosaic_0001>

<bundles_post_ra>
// kernel: rnn_forward.1
= control target key start
LH: loop header
LB: loop body
LE: loop exit
PB: predicated region body
PF: predicated region fallthrough
CT: control target
= control target key end

     0   :  { %s3245_s15 = smov 0   ;;  %s3247_s16 = smov 0   ;;  %s4131_s0 = inlined_call_operand.vmem [shape: f32[8,32,128], index: 0, kind: input, shape index: {}]   ;;  %s4132_s1 = inlined_call_operand.vmem [shape: f32[32,128], index: 1, kind: input, shape index: {}]   ;;  %s4133_s2 = inlined_call_operand.vmem [shape: bf16[128,128], index: 2, kind: input, shape index: {}]   ;;  %s4134_s3 = inlined_call_operand.vmem [shape: bf16[128,128], index: 3, kind: input, shape index: {}]   ;;  %s4135_s4 = inlined_call_operand.vmem [shape: f32[8,32,128], index: 4, kind: output, shape index: {}]  }
   0x1   :  { %s3249_s17 = smov 0   ;;  %s3251_s18 = smov 0  }
   0x2   :  { %s3253_s19 = smov 0  }
   0x3 LB: > { %s26_s20 = sadd.s32 1, %s3212_s18  ;;  %s2081_s21 = sadd.s32 4294967295, %s3216_s19   ;;  %s3216_s19 = sphi %s3253_s19, %s14_s19   ;;  %s3212_s18 = sphi %s3251_s18, %s4140_s18   ;;  %s3208_s17 = sphi %s3249_s17, %s4139_s17   ;;  %s3204_s16 = sphi %s3247_s16, %s4138_s16   ;;  %s3200_s15 = sphi %s3245_s15, %s4137_s15  }
   0x4   : > { %p28_p0 = scmp.ge.s32.totalorder %s26_s20, 2  ;;  %p42_p1 = scmp.ne.s32.totalorder %s3204_s16, %s3200_s15 }
   0x5   : > { %p43_p2 = scmp.eq.s32.totalorder %s3216_s19, 0  ;;  %p142_p4 = scmp.eq.s32.totalorder %s2081_s21, 1 }
   0x6   : > { %s4142_s20 = smov (%p28_p0, %s26_s20), 0  ;;  %s35_s23 = sadd.s32 1, %s3204_s16 }
   0x7   : > { %p44_p3 = por %p43_p2, %p42_p1  ;;  %s31_s22 = ssub.s32 %s3212_s18, %s4142_s20 }
   0x8   : > { %p33_p5 = scmp.eq.s32.totalorder %s31_s22, 0  ;;  %p3280_p6 = por %p142_p4, %p42_p1 }
   0x9   : > { %p2084_p7 = scmp.ge.s32.totalorder %s3216_s19, 2 }
   0xa   : > { %s3285_s25 = scalar_select %p33_p5, %s3204_s16, %s35_s23  }
   0xb   : > { %170 = sbr.rel (%p2084_p7) target bundleno = 28 (0x1c), region = 24 }
  0x10   : > { %173 = sbr.rel (!%p44_p3) target bundleno = 28 (0x1c), region = 28  ;;  %s175_s26 = sand.u32 (%p44_p3), 1, %s3204_s16  }
  0x11   : > { %s2142_s27 = sshll.u32 (%p44_p3), %s3212_s18, 4  ;;  %s2085_s28 = sshll.u32 (%p44_p3), %s175_s26, 7 }
  0x12   : > { %s3293_s5 = scalar_lea.vmem (%p44_p3), %s4131_s0, %s2142_s27  ;;  %s177_s6 = scalar_lea.vmem (%p44_p3), [#allocation3], %s2085_s28 }
  0x13   : > { %v242_v0 = vld [vmem:[%s3293_s5] sm:$0xff] (%p44_p3)  ;;  %v244_v1 = vld [vmem:[%s3293_s5 + $0x8] sm:$0xff] (%p44_p3) }
  0x14   : > { %v246_v2 = vld [vmem:[%s3293_s5 + $0x20] sm:$0xff] (%p44_p3)  ;;  %243 = vst [vmem:[%s177_s6] sm:$0xff] (%p44_p3), %v242_v0  ;;  %245 = vst [vmem:[%s177_s6 + $0x8] sm:$0xff] (%p44_p3), %v244_v1  ;;  %v248_v3 = vld [vmem:[%s3293_s5 + $0x28] sm:$0xff] (%p44_p3) }
  0x15   : > { %247 = vst [vmem:[%s177_s6 + $0x10] sm:$0xff] %v246_v2  ;;  %v250_v4 = vld [vmem:[%s3293_s5 + $0x40] sm:$0xff]  ;;  %v252_v5 = vld [vmem:[%s3293_s5 + $0x48] sm:$0xff]  ;;  %249 = vst [vmem:[%s177_s6 + $0x18] sm:$0xff] %v248_v3 }
  0x16   : > { %251 = vst [vmem:[%s177_s6 + $0x20] sm:$0xff] %v250_v4  ;;  %253 = vst [vmem:[%s177_s6 + $0x28] sm:$0xff] %v252_v5  ;;  %v254_v6 = vld [vmem:[%s3293_s5 + $0x60] sm:$0xff]  ;;  %v256_v7 = vld [vmem:[%s3293_s5 + $0x68] sm:$0xff] }
  0x17   : > { %v258_v8 = vld [vmem:[%s3293_s5 + $0x80] sm:$0xff]  ;;  %255 = vst [vmem:[%s177_s6 + $0x30] sm:$0xff] %v254_v6  ;;  %257 = vst [vmem:[%s177_s6 + $0x38] sm:$0xff] %v256_v7  ;;  %v260_v9 = vld [vmem:[%s3293_s5 + $0x88] sm:$0xff] }
  0x18   : > { %259 = vst [vmem:[%s177_s6 + $0x40] sm:$0xff] %v258_v8  ;;  %v262_v10 = vld [vmem:[%s3293_s5 + $0xa0] sm:$0xff]  ;;  %v264_v11 = vld [vmem:[%s3293_s5 + $0xa8] sm:$0xff]  ;;  %261 = vst [vmem:[%s177_s6 + $0x48] sm:$0xff] %v260_v9 }
  0x19   : > { %263 = vst [vmem:[%s177_s6 + $0x50] sm:$0xff] %v262_v10  ;;  %265 = vst [vmem:[%s177_s6 + $0x58] sm:$0xff] %v264_v11  ;;  %v266_v12 = vld [vmem:[%s3293_s5 + $0xc0] sm:$0xff]  ;;  %v268_v13 = vld [vmem:[%s3293_s5 + $0xc8] sm:$0xff] }
  0x1a   : > { %v270_v14 = vld [vmem:[%s3293_s5 + $0xe0] sm:$0xff]  ;;  %267 = vst [vmem:[%s177_s6 + $0x60] sm:$0xff] %v266_v12  ;;  %269 = vst [vmem:[%s177_s6 + $0x68] sm:$0xff] %v268_v13  ;;  %v272_v15 = vld [vmem:[%s3293_s5 + $0xe8] sm:$0xff] }
  0x1b   : > { %271 = vst [vmem:[%s177_s6 + $0x70] sm:$0xff] %v270_v14  ;;  %273 = vst [vmem:[%s177_s6 + $0x78] sm:$0xff] %v272_v15 }
  0x1c PF: > { %p2088_p8 = scmp.ge.s32.totalorder %s3216_s19, 1  ;;  %p287_p9 = scmp.lt.s32.totalorder %s3216_s19, 3 }
  0x1e   : > { %p288_p10 = pnand %p2088_p8, %p287_p9 }
  0x1f   : > { %s2091_s13 = sshll.u32 (!%p288_p10), %s3208_s17, 1 }
  0x20   : > { %291 = sbr.rel (%p288_p10) target bundleno = 1992 (0x7c8), region = 70  ;;  %p326_p11 = scmp.lt.s32.totalorder (!%p288_p10), %s2091_s13, 3 }
  0x25   : > { %v3316_v16 = vld [vmem:[%s4133_s2 + $0x38] sm:$0xff]   ;;  %v3218_v17 = vmov 0.0   ;;  %v3324_v18 = vld [vmem:[%s4133_s2 + $0x30] sm:$0xff]   ;;  %vm3219_vm0 = vmmov 0   ;;  %v3335_v19 = vld [vmem:[%s4133_s2 + $0x28] sm:$0xff]   ;;  %s4144_s13 = smov (!%p326_p11, %s2091_s13), 3 }
  0x26   : > { %2432 = vmatprep.subr.bf16.mxu0 %v3218_v17  ;;  %2452 = vmatprep.subr.bf16.mxu1 %v3218_v17  ;;  %v3342_v20 = vld [vmem:[%s4134_s3 + $0x38] sm:$0xff]   ;;  %v3347_v21 = vld [vmem:[%s4133_s2 + $0x20] sm:$0xff]   ;;  %v3354_v22 = vld [vmem:[%s4134_s3 + $0x30] sm:$0xff]   ;;  %s2092_s8 = sshll.u32 %s4144_s13, 3 }
  0x27   : > { %2433 = vmatpush3.bf16.msra.mxu0 %v3316_v16  ;;  %2448 = vmatprep.mubr.msk.bf16.mxu0 %vm3219_vm0, %v3218_v17  ;;  %v3361_v23 = vld [vmem:[%s4133_s2 + $0x18] sm:$0xff]   ;;  %v3366_v24 = vld [vmem:[%s4134_s3 + $0x28] sm:$0xff]   ;;  %v3376_v25 = vld [vmem:[%s4133_s2 + $0x10] sm:$0xff]   ;;  %s329_s14 = scalar_lea.vmem %s4132_s1, %s2092_s8  ;;  %s294_s8 = sand.u32 1, %s3200_s15  }
  0x28   : > { %2434 = vmatprep.subr.bf16.mxu0 %v3218_v17  ;;  %2468 = vmatprep.mubr.msk.bf16.mxu1 %vm3219_vm0, %v3218_v17  ;;  %v3385_v26 = vld [vmem:[%s4133_s2 + $0x8] sm:$0xff]   ;;  %v3395_v27 = vld [vmem:[%s4133_s2] sm:$0xff]   ;;  %v3446_v33 = vld [vmem:[%s4134_s3 + $0x18] sm:$0xff]   ;;  %s3472_s9 = sshll.u32 %s294_s8, 7 }
  0x29   : > { %2453 = vmatpush3.bf16.msra.mxu1 %v3342_v20  ;;  %v338_v28 = vld [vmem:[%s329_s14] sm:$0xff]  ;;  %v339_v30 = vld [vmem:[%s329_s14 + $0x8] sm:$0xff]  ;;  %v3453_v34 = vld [vmem:[%s4134_s3 + $0x10] sm:$0xff]   ;;  %s3475_s10 = scalar_lea.vmem [#allocation3], %s3472_s9  ;;  %s3553_s15 = scalar_lea.vmem [#allocation4], %s3472_s9 }
  0x2a   : > { %2454 = vmatprep.subr.bf16.mxu1 %v3218_v17  ;;  %v377_v29 = vpack.c.bf16 %v338_v28, %v338_v28  ;;  %v559_v31 = vpack.c.bf16 %v339_v30, %v339_v30  ;;  %v3438_v32 = vld [vmem:[%s4134_s3 + $0x20] sm:$0xff]   ;;  %v3459_v35 = vld [vmem:[%s4134_s3 + $0x8] sm:$0xff]   ;;  %v2109_v53 = vld [vmem:[%s3475_s10 + $0x10] sm:$0xff] }
  0x2b   : > { %2435 = vmatpush3.bf16.msra.mxu0 %v3324_v18  ;;  %v3466_v36 = vld [vmem:[%s4134_s3] sm:$0xff]   ;;  %v375_v45 = vld [vmem:[%s3475_s10 + $0x8] sm:$0xff]  ;;  %v2110_v1 = vld [vmem:[%s3475_s10 + $0x18] sm:$0xff] }
  0x2c   : > { %2436 = vmatprep.subr.bf16.mxu0 %v3218_v17  ;;  %v374_v37 = vld [vmem:[%s3475_s10] sm:$0xff] }
  0x2d   : > { %2455 = vmatpush3.bf16.msra.mxu1 %v3354_v22  ;;  %v2113_v13 = vld [vmem:[%s3475_s10 + $0x20] sm:$0xff] }
  0x2e   : > { %2456 = vmatprep.subr.bf16.mxu1 %v3218_v17 }
  0x2f   : > { %2437 = vmatpush3.bf16.msra.mxu0 %v3335_v19 }
  0x30   : > { %2438 = vmatprep.subr.bf16.mxu0 %v3218_v17 }
  0x31   : > { %2457 = vmatpush3.bf16.msra.mxu1 %v3366_v24 }
  0x32   : > { %2458 = vmatprep.subr.bf16.mxu1 %v3218_v17 }
  0x33   : > { %2439 = vmatpush3.bf16.msra.mxu0 %v3347_v21 }
  0x34   : > { %2440 = vmatprep.subr.bf16.mxu0 %v3218_v17 }
  0x35   : > { %2459 = vmatpush3.bf16.msra.mxu1 %v3438_v32 }
  0x36   : > { %2460 = vmatprep.subr.bf16.mxu1 %v3218_v17 }
  0x37   : > { %2441 = vmatpush3.bf16.msra.mxu0 %v3361_v23 }
  0x38   : > { %2442 = vmatprep.subr.bf16.mxu0 %v3218_v17 }
  0x39   : > { %2461 = vmatpush3.bf16.msra.mxu1 %v3446_v33 }
  0x3a   : > { %2462 = vmatprep.subr.bf16.mxu1 %v3218_v17 }
  0x3b   : > { %2443 = vmatpush3.bf16.msra.mxu0 %v3376_v25 }
  0x3c   : > { %2444 = vmatprep.subr.bf16.mxu0 %v3218_v17 }
  0x3d   : > { %2463 = vmatpush3.bf16.msra.mxu1 %v3453_v34 }
  0x3e   : > { %2464 = vmatprep.subr.bf16.mxu1 %v3218_v17 }
  0x3f   : > { %2445 = vmatpush3.bf16.msra.mxu0 %v3385_v26 }
  0x40   : > { %2446 = vmatprep.subr.bf16.mxu0 %v3218_v17 }
  0x41   : > { %2465 = vmatpush3.bf16.msra.mxu1 %v3459_v35 }
  0x42   : > { %2466 = vmatprep.subr.bf16.mxu1 %v3218_v17 }
  0x43   : > { %2447 = vmatpush3.bf16.msra.mxu0 %v3395_v27 }
  0x44   : > { %2472 = vmatprep.subr.bf16.mxu0 %v3218_v17 }
  0x45   : > { %2467 = vmatpush3.bf16.msra.mxu1 %v3466_v36 }
  0x46   : > { %2449 = vmatmul.mubr.bf16.vlgmr.msra.gmra.mxu0 %v377_v29  ;;  %2492 = vmatprep.subr.bf16.mxu1 %v3218_v17 }
  0x47   : > { %2473 = vmatpush3.bf16.msra.mxu0 %v3316_v16  ;;  %2488 = vmatprep.mubr.msk.bf16.mxu0 %vm3219_vm0, %v3218_v17 }
  0x48   : > { %2474 = vmatprep.subr.bf16.mxu0 %v3218_v17 }
  0x4b   : > { %2475 = vmatpush3.bf16.msra.mxu0 %v3324_v18 }
  0x4c   : > { %2476 = vmatprep.subr.bf16.mxu0 %v3218_v17 }
  0x4f   : > { %2477 = vmatpush3.bf16.msra.mxu0 %v3335_v19 }
  0x50   : > { %2478 = vmatprep.subr.bf16.mxu0 %v3218_v17 }
  0x53   : > { %2479 = vmatpush3.bf16.msra.mxu0 %v3347_v21 }
  0x54   : > { %2480 = vmatprep.subr.bf16.mxu0 %v3218_v17 }
  0x57   : > { %2481 = vmatpush3.bf16.msra.mxu0 %v3361_v23 }
  0x58   : > { %2482 = vmatprep.subr.bf16.mxu0 %v3218_v17 }
  0x5b   : > { %2483 = vmatpush3.bf16.msra.mxu0 %v3376_v25 }
  0x5c   : > { %2484 = vmatprep.subr.bf16.mxu0 %v3218_v17 }
  0x5f   : > { %2485 = vmatpush3.bf16.msra.mxu0 %v3385_v26 }
  0x60   : > { %2486 = vmatprep.subr.bf16.mxu0 %v3218_v17 }
  0x63   : > { %2487 = vmatpush3.bf16.msra.mxu0 %v3395_v27 }
  0x64   : > { %2512 = vmatprep.subr.bf16.mxu0 %v3218_v17 }
  0x66   : > { %2489 = vmatmul.mubr.bf16.vlgmr.msra.gmra.mxu0 %v559_v31 }
  0x67   : > { %2513 = vmatpush3.bf16.msra.mxu0 %v3316_v16  ;;  %2528 = vmatprep.mubr.msk.bf16.mxu0 %vm3219_vm0, %v3218_v17 }
  0x68   : > { %2514 = vmatprep.subr.bf16.mxu0 %v3218_v17 }
  0x6b   : > { %2515 = vmatpush3.bf16.msra.mxu0 %v3324_v18 }
  0x6c   : > { %2516 = vmatprep.subr.bf16.mxu0 %v3218_v17 }
  0x6f   : > { %2517 = vmatpush3.bf16.msra.mxu0 %v3335_v19 }
  0x70   : > { %2518 = vmatprep.subr.bf16.mxu0 %v3218_v17 }
  0x73   : > { %2519 = vmatpush3.bf16.msra.mxu0 %v3347_v21 }
  0x74   : > { %2520 = vmatprep.subr.bf16.mxu0 %v3218_v17 }
  0x77   : > { %2521 = vmatpush3.bf16.msra.mxu0 %v3361_v23 }
  0x78   : > { %2522 = vmatprep.subr.bf16.mxu0 %v3218_v17 }
  0x7b   : > { %2523 = vmatpush3.bf16.msra.mxu0 %v3376_v25 }
  0x7c   : > { %2524 = vmatprep.subr.bf16.mxu0 %v3218_v17 }
  0x7f   : > { %2525 = vmatpush3.bf16.msra.mxu0 %v3385_v26 }
  0x80   : > { %2526 = vmatprep.subr.bf16.mxu0 %v3218_v17 }
  0x83   : > { %2527 = vmatpush3.bf16.msra.mxu0 %v3395_v27 }
  0x84   : > { %2552 = vmatprep.subr.bf16.mxu0 %v3218_v17 }
 0x106   : > { %v460_v38 = vpop.f32.mrf.mxu0 }
 0x107   : > { %v466_v39 = vadd.f32 %v460_v38, %v374_v37 }
 0x108   : > { %v2450_v40 = vpop.f32.mrf.mxu0 }
 0x109   : > { %3130 = vtanh.f32 %v466_v39 }
 0x10a   : > { %v463_v41 = vpop.f32.mrf.mxu0 }
 0x10c   : > { %v2451_v42 = vpop.f32.mrf.mxu0 }
 0x10d   : > { %v2114_v42 = vld [vmem:[%s3475_s10 + $0x28] sm:$0xff] }
 0x116   : > { %v3131_v43 = vpop.eup %3130 }
 0x117   : > { %v469_v44 = vpack.c.bf16 %v3131_v43, %v3131_v43 }
 0x119   : > { %2469 = vmatmul.mubr.bf16.vlgmr.msra.gmra.mxu1 %v469_v44  ;;  %2529 = vmatmul.mubr.bf16.vlgmr.msra.gmra.mxu0 %v469_v44 }
 0x11a   : > { %2493 = vmatpush3.bf16.msra.mxu1 %v3342_v20  ;;  %2553 = vmatpush3.bf16.msra.mxu0 %v3316_v16 }
 0x11b   : > { %2494 = vmatprep.subr.bf16.mxu1 %v3218_v17  ;;  %2554 = vmatprep.subr.bf16.mxu0 %v3218_v17 }
 0x11c   : > { %2508 = vmatprep.mubr.msk.bf16.mxu1 %vm3219_vm0, %v3218_v17  ;;  %2568 = vmatprep.mubr.msk.bf16.mxu0 %vm3219_vm0, %v3218_v17 }
 0x11e   : > { %2495 = vmatpush3.bf16.msra.mxu1 %v3354_v22  ;;  %2555 = vmatpush3.bf16.msra.mxu0 %v3324_v18 }
 0x11f   : > { %2496 = vmatprep.subr.bf16.mxu1 %v3218_v17  ;;  %2556 = vmatprep.subr.bf16.mxu0 %v3218_v17 }
 0x122   : > { %2497 = vmatpush3.bf16.msra.mxu1 %v3366_v24  ;;  %2557 = vmatpush3.bf16.msra.mxu0 %v3335_v19 }
 0x123   : > { %2498 = vmatprep.subr.bf16.mxu1 %v3218_v17  ;;  %2558 = vmatprep.subr.bf16.mxu0 %v3218_v17 }
 0x126   : > { %v594_v46 = vpop.f32.mrf.mxu0  ;;  %2499 = vmatpush3.bf16.msra.mxu1 %v3438_v32  ;;  %2559 = vmatpush3.bf16.msra.mxu0 %v3347_v21 }
 0x127   : > { %v600_v47 = vadd.f32 %v594_v46, %v375_v45  ;;  %2500 = vmatprep.subr.bf16.mxu1 %v3218_v17  ;;  %2560 = vmatprep.subr.bf16.mxu0 %v3218_v17 }
 0x128   : > { %v2490_v48 = vpop.f32.mrf.mxu0 }
 0x129   : > { %3132 = vtanh.f32 %v600_v47 }
 0x12a   : > { %v597_v49 = vpop.f32.mrf.mxu0  ;;  %2501 = vmatpush3.bf16.msra.mxu1 %v3446_v33  ;;  %2561 = vmatpush3.bf16.msra.mxu0 %v3361_v23 }
 0x12b   : > { %2502 = vmatprep.subr.bf16.mxu1 %v3218_v17  ;;  %2562 = vmatprep.subr.bf16.mxu0 %v3218_v17 }
 0x12c   : > { %v2491_v50 = vpop.f32.mrf.mxu0 }
 0x12e   : > { %2503 = vmatpush3.bf16.msra.mxu1 %v3453_v34  ;;  %2563 = vmatpush3.bf16.msra.mxu0 %v3376_v25 }
 0x12f   : > { %2504 = vmatprep.subr.bf16.mxu1 %v3218_v17  ;;  %2564 = vmatprep.subr.bf16.mxu0 %v3218_v17 }
 0x132   : > { %2505 = vmatpush3.bf16.msra.mxu1 %v3459_v35  ;;  %2565 = vmatpush3.bf16.msra.mxu0 %v3385_v26 }
 0x133   : > { %2506 = vmatprep.subr.bf16.mxu1 %v3218_v17  ;;  %2566 = vmatprep.subr.bf16.mxu0 %v3218_v17 }
 0x136   : > { %v3133_v51 = vpop.eup %3132  ;;  %2507 = vmatpush3.bf16.msra.mxu1 %v3466_v36  ;;  %2567 = vmatpush3.bf16.msra.mxu0 %v3395_v27 }
 0x137   : > { %v603_v52 = vpack.c.bf16 %v3133_v51, %v3133_v51  ;;  %2532 = vmatprep.subr.bf16.mxu1 %v3218_v17  ;;  %2592 = vmatprep.subr.bf16.mxu0 %v3218_v17 }
 0x139   : > { %2509 = vmatmul.mubr.bf16.vlgmr.msra.gmra.mxu1 %v603_v52  ;;  %2569 = vmatmul.mubr.bf16.vlgmr.msra.gmra.mxu0 %v603_v52 }
 0x13a   : > { %2533 = vmatpush3.bf16.msra.mxu1 %v3342_v20  ;;  %2593 = vmatpush3.bf16.msra.mxu0 %v3316_v16 }
 0x13b   : > { %2534 = vmatprep.subr.bf16.mxu1 %v3218_v17  ;;  %2594 = vmatprep.subr.bf16.mxu0 %v3218_v17 }
 0x13c   : > { %2548 = vmatprep.mubr.msk.bf16.mxu1 %vm3219_vm0, %v3218_v17  ;;  %2608 = vmatprep.mubr.msk.bf16.mxu0 %vm3219_vm0, %v3218_v17 }
 0x13e   : > { %2535 = vmatpush3.bf16.msra.mxu1 %v3354_v22  ;;  %2595 = vmatpush3.bf16.msra.mxu0 %v3324_v18 }
 0x13f   : > { %2536 = vmatprep.subr.bf16.mxu1 %v3218_v17  ;;  %2596 = vmatprep.subr.bf16.mxu0 %v3218_v17 }
 0x142   : > { %2537 = vmatpush3.bf16.msra.mxu1 %v3366_v24  ;;  %2597 = vmatpush3.bf16.msra.mxu0 %v3335_v19 }
 0x143   : > { %2538 = vmatprep.subr.bf16.mxu1 %v3218_v17  ;;  %2598 = vmatprep.subr.bf16.mxu0 %v3218_v17 }
 0x146   : > { %2539 = vmatpush3.bf16.msra.mxu1 %v3438_v32  ;;  %2599 = vmatpush3.bf16.msra.mxu0 %v3347_v21 }
 0x147   : > { %2540 = vmatprep.subr.bf16.mxu1 %v3218_v17  ;;  %2600 = vmatprep.subr.bf16.mxu0 %v3218_v17 }
 0x14a   : > { %2541 = vmatpush3.bf16.msra.mxu1 %v3446_v33  ;;  %2601 = vmatpush3.bf16.msra.mxu0 %v3361_v23 }
 0x14b   : > { %2542 = vmatprep.subr.bf16.mxu1 %v3218_v17  ;;  %2602 = vmatprep.subr.bf16.mxu0 %v3218_v17 }
 0x14e   : > { %2543 = vmatpush3.bf16.msra.mxu1 %v3453_v34  ;;  %2603 = vmatpush3.bf16.msra.mxu0 %v3376_v25 }
 0x14f   : > { %2544 = vmatprep.subr.bf16.mxu1 %v3218_v17  ;;  %2604 = vmatprep.subr.bf16.mxu0 %v3218_v17 }
 0x152   : > { %2545 = vmatpush3.bf16.msra.mxu1 %v3459_v35  ;;  %2605 = vmatpush3.bf16.msra.mxu0 %v3385_v26 }
 0x153   : > { %2546 = vmatprep.subr.bf16.mxu1 %v3218_v17  ;;  %2606 = vmatprep.subr.bf16.mxu0 %v3218_v17 }
 0x156   : > { %2547 = vmatpush3.bf16.msra.mxu1 %v3466_v36  ;;  %2607 = vmatpush3.bf16.msra.mxu0 %v3395_v27 }
 0x157   : > { %2572 = vmatprep.subr.bf16.mxu1 %v3218_v17  ;;  %2632 = vmatprep.subr.bf16.mxu0 %v3218_v17 }
 0x1d9   : > { %v552_v54 = vpop.f32.mrf.mxu1  ;;  %v685_v55 = vpop.f32.mrf.mxu0 }
 0x1da   : > { %644 = vst [vmem:[%s3553_s15] sm:$0xff] %v552_v54  ;;  %v691_v56 = vadd.f32 %v2109_v53, %v685_v55  ;;  %v2117_v54 = vld [vmem:[%s3475_s10 + $0x30] sm:$0xff] }
 0x1db   : > { %v2470_v57 = vpop.f32.mrf.mxu1  ;;  %v2530_v58 = vpop.f32.mrf.mxu0 }
 0x1dc   : > { %3134 = vtanh.f32 %v691_v56 }
 0x1dd   : > { %v555_v59 = vpop.f32.mrf.mxu1  ;;  %v688_v60 = vpop.f32.mrf.mxu0 }
 0x1df   : > { %v2471_v61 = vpop.f32.mrf.mxu1  ;;  %v2531_v62 = vpop.f32.mrf.mxu0 }
 0x1e9   : > { %v3135_v63 = vpop.eup %3134 }
 0x1ea   : > { %v694_v0 = vpack.c.bf16 %v3135_v63, %v3135_v63 }
 0x1ec   : > { %2549 = vmatmul.mubr.bf16.vlgmr.msra.gmra.mxu1 %v694_v0  ;;  %2609 = vmatmul.mubr.bf16.vlgmr.msra.gmra.mxu0 %v694_v0 }
 0x1ed   : > { %2573 = vmatpush3.bf16.msra.mxu1 %v3342_v20  ;;  %2633 = vmatpush3.bf16.msra.mxu0 %v3316_v16 }
 0x1ee   : > { %2574 = vmatprep.subr.bf16.mxu1 %v3218_v17  ;;  %2634 = vmatprep.subr.bf16.mxu0 %v3218_v17 }
 0x1ef   : > { %2588 = vmatprep.mubr.msk.bf16.mxu1 %vm3219_vm0, %v3218_v17  ;;  %2648 = vmatprep.mubr.msk.bf16.mxu0 %vm3219_vm0, %v3218_v17 }
 0x1f1   : > { %2575 = vmatpush3.bf16.msra.mxu1 %v3354_v22  ;;  %2635 = vmatpush3.bf16.msra.mxu0 %v3324_v18 }
 0x1f2   : > { %2576 = vmatprep.subr.bf16.mxu1 %v3218_v17  ;;  %2636 = vmatprep.subr.bf16.mxu0 %v3218_v17 }
 0x1f5   : > { %2577 = vmatpush3.bf16.msra.mxu1 %v3366_v24  ;;  %2637 = vmatpush3.bf16.msra.mxu0 %v3335_v19 }
 0x1f6   : > { %2578 = vmatprep.subr.bf16.mxu1 %v3218_v17  ;;  %2638 = vmatprep.subr.bf16.mxu0 %v3218_v17 }
 0x1f9   : > { %v638_v2 = vpop.f32.mrf.mxu1  ;;  %v771_v3 = vpop.f32.mrf.mxu0  ;;  %2579 = vmatpush3.bf16.msra.mxu1 %v3438_v32  ;;  %2639 = vmatpush3.bf16.msra.mxu0 %v3347_v21 }
 0x1fa   : > { %645 = vst [vmem:[%s3553_s15 + $0x8] sm:$0xff] %v638_v2  ;;  %v777_v4 = vadd.f32 %v2110_v1, %v771_v3  ;;  %2580 = vmatprep.subr.bf16.mxu1 %v3218_v17  ;;  %2640 = vmatprep.subr.bf16.mxu0 %v3218_v17  ;;  %v2118_v2 = vld [vmem:[%s3475_s10 + $0x38] sm:$0xff] }
 0x1fb   : > { %v2510_v5 = vpop.f32.mrf.mxu1  ;;  %v2570_v6 = vpop.f32.mrf.mxu0 }
 0x1fc   : > { %3136 = vtanh.f32 %v777_v4 }
 0x1fd   : > { %v641_v7 = vpop.f32.mrf.mxu1  ;;  %v774_v8 = vpop.f32.mrf.mxu0  ;;  %2581 = vmatpush3.bf16.msra.mxu1 %v3446_v33  ;;  %2641 = vmatpush3.bf16.msra.mxu0 %v3361_v23 }
 0x1fe   : > { %2582 = vmatprep.subr.bf16.mxu1 %v3218_v17  ;;  %2642 = vmatprep.subr.bf16.mxu0 %v3218_v17 }
 0x1ff   : > { %v2511_v9 = vpop.f32.mrf.mxu1  ;;  %v2571_v10 = vpop.f32.mrf.mxu0 }
 0x201   : > { %2583 = vmatpush3.bf16.msra.mxu1 %v3453_v34  ;;  %2643 = vmatpush3.bf16.msra.mxu0 %v3376_v25 }
 0x202   : > { %2584 = vmatprep.subr.bf16.mxu1 %v3218_v17  ;;  %2644 = vmatprep.subr.bf16.mxu0 %v3218_v17 }
 0x205   : > { %2585 = vmatpush3.bf16.msra.mxu1 %v3459_v35  ;;  %2645 = vmatpush3.bf16.msra.mxu0 %v3385_v26 }
 0x206   : > { %2586 = vmatprep.subr.bf16.mxu1 %v3218_v17  ;;  %2646 = vmatprep.subr.bf16.mxu0 %v3218_v17 }
 0x209   : > { %v3137_v11 = vpop.eup %3136  ;;  %2587 = vmatpush3.bf16.msra.mxu1 %v3466_v36  ;;  %2647 = vmatpush3.bf16.msra.mxu0 %v3395_v27 }
 0x20a   : > { %v780_v12 = vpack.c.bf16 %v3137_v11, %v3137_v11  ;;  %2612 = vmatprep.subr.bf16.mxu1 %v3218_v17  ;;  %2672 = vmatprep.subr.bf16.mxu0 %v3218_v17 }
 0x20c   : > { %2589 = vmatmul.mubr.bf16.vlgmr.msra.gmra.mxu1 %v780_v12  ;;  %2649 = vmatmul.mubr.bf16.vlgmr.msra.gmra.mxu0 %v780_v12 }
 0x20d   : > { %2613 = vmatpush3.bf16.msra.mxu1 %v3342_v20  ;;  %2673 = vmatpush3.bf16.msra.mxu0 %v3316_v16 }
 0x20e   : > { %2614 = vmatprep.subr.bf16.mxu1 %v3218_v17  ;;  %2674 = vmatprep.subr.bf16.mxu0 %v3218_v17 }
 0x20f   : > { %2628 = vmatprep.mubr.msk.bf16.mxu1 %vm3219_vm0, %v3218_v17  ;;  %2688 = vmatprep.mubr.msk.bf16.mxu0 %vm3219_vm0, %v3218_v17 }
 0x211   : > { %2615 = vmatpush3.bf16.msra.mxu1 %v3354_v22  ;;  %2675 = vmatpush3.bf16.msra.mxu0 %v3324_v18 }
 0x212   : > { %2616 = vmatprep.subr.bf16.mxu1 %v3218_v17  ;;  %2676 = vmatprep.subr.bf16.mxu0 %v3218_v17 }
 0x215   : > { %2617 = vmatpush3.bf16.msra.mxu1 %v3366_v24  ;;  %2677 = vmatpush3.bf16.msra.mxu0 %v3335_v19 }
 0x216   : > { %2618 = vmatprep.subr.bf16.mxu1 %v3218_v17  ;;  %2678 = vmatprep.subr.bf16.mxu0 %v3218_v17 }
 0x219   : > { %2619 = vmatpush3.bf16.msra.mxu1 %v3438_v32  ;;  %2679 = vmatpush3.bf16.msra.mxu0 %v3347_v21 }
 0x21a   : > { %2620 = vmatprep.subr.bf16.mxu1 %v3218_v17  ;;  %2680 = vmatprep.subr.bf16.mxu0 %v3218_v17 }
 0x21d   : > { %2621 = vmatpush3.bf16.msra.mxu1 %v3446_v33  ;;  %2681 = vmatpush3.bf16.msra.mxu0 %v3361_v23 }
 0x21e   : > { %2622 = vmatprep.subr.bf16.mxu1 %v3218_v17  ;;  %2682 = vmatprep.subr.bf16.mxu0 %v3218_v17 }
 0x221   : > { %2623 = vmatpush3.bf16.msra.mxu1 %v3453_v34  ;;  %2683 = vmatpush3.bf16.msra.mxu0 %v3376_v25 }
 0x222   : > { %2624 = vmatprep.subr.bf16.mxu1 %v3218_v17  ;;  %2684 = vmatprep.subr.bf16.mxu0 %v3218_v17 }
 0x225   : > { %2625 = vmatpush3.bf16.msra.mxu1 %v3459_v35  ;;  %2685 = vmatpush3.bf16.msra.mxu0 %v3385_v26 }
 0x226   : > { %2626 = vmatprep.subr.bf16.mxu1 %v3218_v17  ;;  %2686 = vmatprep.subr.bf16.mxu0 %v3218_v17 }
 0x229   : > { %2627 = vmatpush3.bf16.msra.mxu1 %v3466_v36  ;;  %2687 = vmatpush3.bf16.msra.mxu0 %v3395_v27 }
 0x22a   : > { %2652 = vmatprep.subr.bf16.mxu1 %v3218_v17  ;;  %2712 = vmatprep.subr.bf16.mxu0 %v3218_v17 }
 0x2ac   : > { %v729_v14 = vpop.f32.mrf.mxu1  ;;  %v863_v15 = vpop.f32.mrf.mxu0 }
 0x2ad   : > { %2111 = vst [vmem:[%s3553_s15 + $0x10] sm:$0xff] %v729_v14  ;;  %v869_v28 = vadd.f32 %v2113_v13, %v863_v15 }
 0x2ae   : > { %v2550_v29 = vpop.f32.mrf.mxu1  ;;  %v2610_v30 = vpop.f32.mrf.mxu0 }
 0x2af   : > { %3138 = vtanh.f32 %v869_v28 }
 0x2b0   : > { %v732_v31 = vpop.f32.mrf.mxu1  ;;  %v866_v37 = vpop.f32.mrf.mxu0 }
 0x2b1   : > { %v3810_v31 = vld [vmem:[%s4133_s2 + $0x28] sm:$0xff]  }
 0x2b2   : > { %v2551_v38 = vpop.f32.mrf.mxu1  ;;  %v2611_v39 = vpop.f32.mrf.mxu0 }
 0x2bc   : > { %v3139_v40 = vpop.eup %3138 }
 0x2bd   : > { %v872_v41 = vpack.c.bf16 %v3139_v40, %v3139_v40 }
 0x2bf   : > { %2629 = vmatmul.mubr.bf16.vlgmr.msra.gmra.mxu1 %v872_v41  ;;  %2689 = vmatmul.mubr.bf16.vlgmr.msra.gmra.mxu0 %v872_v41 }
 0x2c0   : > { %2653 = vmatpush3.bf16.msra.mxu1 %v3342_v20  ;;  %2713 = vmatpush3.bf16.msra.mxu0 %v3316_v16 }
 0x2c1   : > { %2654 = vmatprep.subr.bf16.mxu1 %v3218_v17  ;;  %2714 = vmatprep.subr.bf16.mxu0 %v3218_v17 }
 0x2c2   : > { %2668 = vmatprep.mubr.msk.bf16.mxu1 %vm3219_vm0, %v3218_v17  ;;  %2728 = vmatprep.mubr.msk.bf16.mxu0 %vm3219_vm0, %v3218_v17 }
 0x2c4   : > { %2655 = vmatpush3.bf16.msra.mxu1 %v3354_v22  ;;  %2715 = vmatpush3.bf16.msra.mxu0 %v3324_v18 }
 0x2c5   : > { %2656 = vmatprep.subr.bf16.mxu1 %v3218_v17  ;;  %2716 = vmatprep.subr.bf16.mxu0 %v3218_v17 }
 0x2c8   : > { %2657 = vmatpush3.bf16.msra.mxu1 %v3366_v24  ;;  %2717 = vmatpush3.bf16.msra.mxu0 %v3335_v19 }
 0x2c9   : > { %2658 = vmatprep.subr.bf16.mxu1 %v3218_v17  ;;  %2718 = vmatprep.subr.bf16.mxu0 %v3218_v17 }
 0x2cc   : > { %v815_v43 = vpop.f32.mrf.mxu1  ;;  %v949_v44 = vpop.f32.mrf.mxu0  ;;  %2659 = vmatpush3.bf16.msra.mxu1 %v3438_v32  ;;  %2719 = vmatpush3.bf16.msra.mxu0 %v3347_v21 }
 0x2cd   : > { %2112 = vst [vmem:[%s3553_s15 + $0x18] sm:$0xff] %v815_v43  ;;  %v955_v45 = vadd.f32 %v2114_v42, %v949_v44  ;;  %2660 = vmatprep.subr.bf16.mxu1 %v3218_v17  ;;  %2720 = vmatprep.subr.bf16.mxu0 %v3218_v17  ;;  %v3830_v44 = vld [vmem:[%s4133_s2 + $0x18] sm:$0xff]  }
 0x2ce   : > { %v2590_v46 = vpop.f32.mrf.mxu1  ;;  %v2650_v47 = vpop.f32.mrf.mxu0 }
 0x2cf   : > { %3140 = vtanh.f32 %v955_v45  ;;  %v3839_v47 = vld [vmem:[%s4133_s2 + $0x10] sm:$0xff]  }
 0x2d0   : > { %v818_v48 = vpop.f32.mrf.mxu1  ;;  %v952_v49 = vpop.f32.mrf.mxu0  ;;  %2661 = vmatpush3.bf16.msra.mxu1 %v3446_v33  ;;  %2721 = vmatpush3.bf16.msra.mxu0 %v3361_v23 }
 0x2d1   : > { %2662 = vmatprep.subr.bf16.mxu1 %v3218_v17  ;;  %2722 = vmatprep.subr.bf16.mxu0 %v3218_v17  ;;  %v3848_v48 = vld [vmem:[%s4133_s2 + $0x8] sm:$0xff]  }
 0x2d2   : > { %v2591_v50 = vpop.f32.mrf.mxu1  ;;  %v2651_v51 = vpop.f32.mrf.mxu0 }
 0x2d3   : > { %v3857_v50 = vld [vmem:[%s4133_s2] sm:$0xff]  }
 0x2d4   : > { %2663 = vmatpush3.bf16.msra.mxu1 %v3453_v34  ;;  %2723 = vmatpush3.bf16.msra.mxu0 %v3376_v25 }
 0x2d5   : > { %2664 = vmatprep.subr.bf16.mxu1 %v3218_v17  ;;  %2724 = vmatprep.subr.bf16.mxu0 %v3218_v17 }
 0x2d8   : > { %2665 = vmatpush3.bf16.msra.mxu1 %v3459_v35  ;;  %2725 = vmatpush3.bf16.msra.mxu0 %v3385_v26 }
 0x2d9   : > { %2666 = vmatprep.subr.bf16.mxu1 %v3218_v17  ;;  %2726 = vmatprep.subr.bf16.mxu0 %v3218_v17 }
 0x2dc   : > { %v3141_v52 = vpop.eup %3140  ;;  %2667 = vmatpush3.bf16.msra.mxu1 %v3466_v36  ;;  %2727 = vmatpush3.bf16.msra.mxu0 %v3395_v27 }
 0x2dd   : > { %v958_v53 = vpack.c.bf16 %v3141_v52, %v3141_v52  ;;  %2692 = vmatprep.subr.bf16.mxu1 %v3218_v17  ;;  %2752 = vmatprep.subr.bf16.mxu0 %v3218_v17  ;;  %v3865_v52 = vld [vmem:[%s4134_s3 + $0x38] sm:$0xff]  }
 0x2df   : > { %2669 = vmatmul.mubr.bf16.vlgmr.msra.gmra.mxu1 %v958_v53  ;;  %2729 = vmatmul.mubr.bf16.vlgmr.msra.gmra.mxu0 %v958_v53  ;;  %v3878_v53 = vld [vmem:[%s4134_s3 + $0x30] sm:$0xff]  }
 0x2e0   : > { %2693 = vmatpush3.bf16.msra.mxu1 %v3342_v20  ;;  %2753 = vmatpush3.bf16.msra.mxu0 %v3316_v16 }
 0x2e1   : > { %2694 = vmatprep.subr.bf16.mxu1 %v3218_v17  ;;  %2754 = vmatprep.subr.bf16.mxu0 %v3218_v17 }
 0x2e2   : > { %2708 = vmatprep.mubr.msk.bf16.mxu1 %vm3219_vm0, %v3218_v17  ;;  %2768 = vmatprep.mubr.msk.bf16.mxu0 %vm3219_vm0, %v3218_v17 }
 0x2e4   : > { %2695 = vmatpush3.bf16.msra.mxu1 %v3354_v22  ;;  %2755 = vmatpush3.bf16.msra.mxu0 %v3324_v18 }
 0x2e5   : > { %2696 = vmatprep.subr.bf16.mxu1 %v3218_v17  ;;  %2756 = vmatprep.subr.bf16.mxu0 %v3218_v17 }
 0x2e8   : > { %2697 = vmatpush3.bf16.msra.mxu1 %v3366_v24  ;;  %2757 = vmatpush3.bf16.msra.mxu0 %v3335_v19 }
 0x2e9   : > { %2698 = vmatprep.subr.bf16.mxu1 %v3218_v17  ;;  %2758 = vmatprep.subr.bf16.mxu0 %v3218_v17 }
 0x2ec   : > { %2699 = vmatpush3.bf16.msra.mxu1 %v3438_v32  ;;  %2759 = vmatpush3.bf16.msra.mxu0 %v3347_v21 }
 0x2ed   : > { %2700 = vmatprep.subr.bf16.mxu1 %v3218_v17  ;;  %2760 = vmatprep.subr.bf16.mxu0 %v3218_v17 }
 0x2f0   : > { %2701 = vmatpush3.bf16.msra.mxu1 %v3446_v33  ;;  %2761 = vmatpush3.bf16.msra.mxu0 %v3361_v23 }
 0x2f1   : > { %2702 = vmatprep.subr.bf16.mxu1 %v3218_v17  ;;  %2762 = vmatprep.subr.bf16.mxu0 %v3218_v17 }
 0x2f4   : > { %2703 = vmatpush3.bf16.msra.mxu1 %v3453_v34  ;;  %2763 = vmatpush3.bf16.msra.mxu0 %v3376_v25 }
 0x2f5   : > { %2704 = vmatprep.subr.bf16.mxu1 %v3218_v17  ;;  %2764 = vmatprep.subr.bf16.mxu0 %v3218_v17 }
 0x2f8   : > { %2705 = vmatpush3.bf16.msra.mxu1 %v3459_v35  ;;  %2765 = vmatpush3.bf16.msra.mxu0 %v3385_v26 }
 0x2f9   : > { %2706 = vmatprep.subr.bf16.mxu1 %v3218_v17  ;;  %2766 = vmatprep.subr.bf16.mxu0 %v3218_v17 }
 0x2fc   : > { %2707 = vmatpush3.bf16.msra.mxu1 %v3466_v36  ;;  %2767 = vmatpush3.bf16.msra.mxu0 %v3395_v27 }
 0x2fd   : > { %2732 = vmatprep.subr.bf16.mxu1 %v3218_v17  ;;  %2792 = vmatprep.subr.bf16.mxu0 %v3218_v17 }
 0x37f   : > { %v907_v55 = vpop.f32.mrf.mxu1  ;;  %v1041_v56 = vpop.f32.mrf.mxu0 }
 0x380   : > { %2115 = vst [vmem:[%s3553_s15 + $0x20] sm:$0xff] %v907_v55  ;;  %v1047_v57 = vadd.f32 %v2117_v54, %v1041_v56  ;;  %v3887_v54 = vld [vmem:[%s4134_s3 + $0x28] sm:$0xff]  }
 0x381   : > { %v2630_v58 = vpop.f32.mrf.mxu1  ;;  %v2690_v59 = vpop.f32.mrf.mxu0 }
 0x382   : > { %3142 = vtanh.f32 %v1047_v57 }
 0x383   : > { %v910_v60 = vpop.f32.mrf.mxu1  ;;  %v1044_v61 = vpop.f32.mrf.mxu0 }
 0x385   : > { %v2631_v62 = vpop.f32.mrf.mxu1  ;;  %v2691_v63 = vpop.f32.mrf.mxu0 }
 0x386   : > { %v2126_v62 = vld [vmem:[%s3475_s10 + $0x58] sm:$0xff] }
 0x38f   : > { %v3143_v0 = vpop.eup %3142 }
 0x390   : > { %v1050_v1 = vpack.c.bf16 %v3143_v0, %v3143_v0 }
 0x392   : > { %2709 = vmatmul.mubr.bf16.vlgmr.msra.gmra.mxu1 %v1050_v1  ;;  %2769 = vmatmul.mubr.bf16.vlgmr.msra.gmra.mxu0 %v1050_v1  ;;  %v3935_v1 = vld [vmem:[%s4134_s3 + $0x20] sm:$0xff]  }
 0x393   : > { %2733 = vmatpush3.bf16.msra.mxu1 %v3342_v20  ;;  %2793 = vmatpush3.bf16.msra.mxu0 %v3316_v16 }
 0x394   : > { %2734 = vmatprep.subr.bf16.mxu1 %v3218_v17  ;;  %2794 = vmatprep.subr.bf16.mxu0 %v3218_v17 }
 0x395   : > { %2748 = vmatprep.mubr.msk.bf16.mxu1 %vm3219_vm0, %v3218_v17  ;;  %2808 = vmatprep.mubr.msk.bf16.mxu0 %vm3219_vm0, %v3218_v17 }
 0x397   : > { %2735 = vmatpush3.bf16.msra.mxu1 %v3354_v22  ;;  %2795 = vmatpush3.bf16.msra.mxu0 %v3324_v18 }
 0x398   : > { %2736 = vmatprep.subr.bf16.mxu1 %v3218_v17  ;;  %2796 = vmatprep.subr.bf16.mxu0 %v3218_v17 }
 0x39b   : > { %2737 = vmatpush3.bf16.msra.mxu1 %v3366_v24  ;;  %2797 = vmatpush3.bf16.msra.mxu0 %v3335_v19 }
 0x39c   : > { %2738 = vmatprep.subr.bf16.mxu1 %v3218_v17  ;;  %2798 = vmatprep.subr.bf16.mxu0 %v3218_v17 }
 0x39f   : > { %v993_v3 = vpop.f32.mrf.mxu1  ;;  %v1127_v4 = vpop.f32.mrf.mxu0  ;;  %2739 = vmatpush3.bf16.msra.mxu1 %v3438_v32  ;;  %2799 = vmatpush3.bf16.msra.mxu0 %v3347_v21 }
 0x3a0   : > { %2116 = vst [vmem:[%s3553_s15 + $0x28] sm:$0xff] %v993_v3  ;;  %v1133_v5 = vadd.f32 %v2118_v2, %v1127_v4  ;;  %2740 = vmatprep.subr.bf16.mxu1 %v3218_v17  ;;  %2800 = vmatprep.subr.bf16.mxu0 %v3218_v17 }
 0x3a1   : > { %v2670_v6 = vpop.f32.mrf.mxu1  ;;  %v2730_v7 = vpop.f32.mrf.mxu0 }
 0x3a2   : > { %3144 = vtanh.f32 %v1133_v5  ;;  %v3945_v7 = vld [vmem:[%s4134_s3 + $0x18] sm:$0xff]  }
 0x3a3   : > { %v996_v8 = vpop.f32.mrf.mxu1  ;;  %v1130_v9 = vpop.f32.mrf.mxu0  ;;  %2741 = vmatpush3.bf16.msra.mxu1 %v3446_v33  ;;  %2801 = vmatpush3.bf16.msra.mxu0 %v3361_v23 }
 0x3a4   : > { %2742 = vmatprep.subr.bf16.mxu1 %v3218_v17  ;;  %2802 = vmatprep.subr.bf16.mxu0 %v3218_v17 }
 0x3a5   : > { %v2671_v10 = vpop.f32.mrf.mxu1  ;;  %v2731_v11 = vpop.f32.mrf.mxu0 }
 0x3a6   : > { %v3954_v10 = vld [vmem:[%s4134_s3 + $0x10] sm:$0xff]   ;;  %v3963_v11 = vld [vmem:[%s4134_s3 + $0x8] sm:$0xff]  }
 0x3a7   : > { %2743 = vmatpush3.bf16.msra.mxu1 %v3453_v34  ;;  %2803 = vmatpush3.bf16.msra.mxu0 %v3376_v25 }
 0x3a8   : > { %2744 = vmatprep.subr.bf16.mxu1 %v3218_v17  ;;  %2804 = vmatprep.subr.bf16.mxu0 %v3218_v17 }
 0x3ab   : > { %2745 = vmatpush3.bf16.msra.mxu1 %v3459_v35  ;;  %2805 = vmatpush3.bf16.msra.mxu0 %v3385_v26 }
 0x3ac   : > { %2746 = vmatprep.subr.bf16.mxu1 %v3218_v17  ;;  %2806 = vmatprep.subr.bf16.mxu0 %v3218_v17 }
 0x3af   : > { %v3145_v12 = vpop.eup %3144  ;;  %2747 = vmatpush3.bf16.msra.mxu1 %v3466_v36  ;;  %2807 = vmatpush3.bf16.msra.mxu0 %v3395_v27 }
 0x3b0   : > { %v1136_v13 = vpack.c.bf16 %v3145_v12, %v3145_v12  ;;  %2772 = vmatprep.subr.bf16.mxu1 %v3218_v17  ;;  %2832 = vmatprep.subr.bf16.mxu0 %v3218_v17 }
 0x3b2   : > { %2749 = vmatmul.mubr.bf16.vlgmr.msra.gmra.mxu1 %v1136_v13  ;;  %2809 = vmatmul.mubr.bf16.vlgmr.msra.gmra.mxu0 %v1136_v13  ;;  %v3972_v13 = vld [vmem:[%s4134_s3] sm:$0xff]  }
 0x3b3   : > { %2773 = vmatpush3.bf16.msra.mxu1 %v3342_v20  ;;  %2833 = vmatpush3.bf16.msra.mxu0 %v3316_v16  ;;  %v2121_v16 = vld [vmem:[%s3475_s10 + $0x40] sm:$0xff] }
 0x3b4   : > { %2774 = vmatprep.subr.bf16.mxu1 %v3218_v17  ;;  %2834 = vmatprep.subr.bf16.mxu0 %v3218_v17 }
 0x3b5   : > { %2788 = vmatprep.mubr.msk.bf16.mxu1 %vm3219_vm0, %v3218_v17  ;;  %2848 = vmatprep.mubr.msk.bf16.mxu0 %vm3219_vm0, %v3218_v17 }
 0x3b7   : > { %2775 = vmatpush3.bf16.msra.mxu1 %v3354_v22  ;;  %2835 = vmatpush3.bf16.msra.mxu0 %v3324_v18 }
 0x3b8   : > { %2776 = vmatprep.subr.bf16.mxu1 %v3218_v17  ;;  %2836 = vmatprep.subr.bf16.mxu0 %v3218_v17 }
 0x3bb   : > { %2777 = vmatpush3.bf16.msra.mxu1 %v3366_v24  ;;  %2837 = vmatpush3.bf16.msra.mxu0 %v3335_v19 }
 0x3bc   : > { %2778 = vmatprep.subr.bf16.mxu1 %v3218_v17  ;;  %2838 = vmatprep.subr.bf16.mxu0 %v3218_v17 }
 0x3bf   : > { %2779 = vmatpush3.bf16.msra.mxu1 %v3438_v32  ;;  %2839 = vmatpush3.bf16.msra.mxu0 %v3347_v21 }
 0x3c0   : > { %2780 = vmatprep.subr.bf16.mxu1 %v3218_v17  ;;  %2840 = vmatprep.subr.bf16.mxu0 %v3218_v17 }
 0x3c3   : > { %2781 = vmatpush3.bf16.msra.mxu1 %v3446_v33  ;;  %2841 = vmatpush3.bf16.msra.mxu0 %v3361_v23 }
 0x3c4   : > { %2782 = vmatprep.subr.bf16.mxu1 %v3218_v17  ;;  %2842 = vmatprep.subr.bf16.mxu0 %v3218_v17 }
 0x3c7   : > { %2783 = vmatpush3.bf16.msra.mxu1 %v3453_v34  ;;  %2843 = vmatpush3.bf16.msra.mxu0 %v3376_v25 }
 0x3c8   : > { %2784 = vmatprep.subr.bf16.mxu1 %v3218_v17  ;;  %2844 = vmatprep.subr.bf16.mxu0 %v3218_v17 }
 0x3cb   : > { %2785 = vmatpush3.bf16.msra.mxu1 %v3459_v35  ;;  %2845 = vmatpush3.bf16.msra.mxu0 %v3385_v26 }
 0x3cc   : > { %2786 = vmatprep.subr.bf16.mxu1 %v3218_v17  ;;  %2846 = vmatprep.subr.bf16.mxu0 %v3218_v17 }
 0x3cf   : > { %2787 = vmatpush3.bf16.msra.mxu1 %v3466_v36  ;;  %2847 = vmatpush3.bf16.msra.mxu0 %v3395_v27  ;;  %v3788_v27 = vld [vmem:[%s4133_s2 + $0x38] sm:$0xff]  }
 0x3d0   : > { %2812 = vmatprep.subr.bf16.mxu1 %v3218_v17  ;;  %2872 = vmatprep.subr.bf16.mxu0 %v3218_v17 }
 0x452   : > { %v1085_v18 = vpop.f32.mrf.mxu1  ;;  %v1219_v19 = vpop.f32.mrf.mxu0 }
 0x453   : > { %2119 = vst [vmem:[%s3553_s15 + $0x30] sm:$0xff] %v1085_v18  ;;  %v1225_v21 = vadd.f32 %v2121_v16, %v1219_v19  ;;  %v2129_v18 = vld [vmem:[%s3475_s10 + $0x60] sm:$0xff] }
 0x454   : > { %v2710_v23 = vpop.f32.mrf.mxu1  ;;  %v2770_v25 = vpop.f32.mrf.mxu0 }
 0x455   : > { %3146 = vtanh.f32 %v1225_v21 }
 0x456   : > { %v1088_v26 = vpop.f32.mrf.mxu1  ;;  %v1222_v14 = vpop.f32.mrf.mxu0 }
 0x458   : > { %v2711_v15 = vpop.f32.mrf.mxu1  ;;  %v2771_v28 = vpop.f32.mrf.mxu0 }
 0x462   : > { %v3147_v29 = vpop.eup %3146 }
 0x463   : > { %v1228_v30 = vpack.c.bf16 %v3147_v29, %v3147_v29 }
 0x465   : > { %2789 = vmatmul.mubr.bf16.vlgmr.msra.gmra.mxu1 %v1228_v30  ;;  %2849 = vmatmul.mubr.bf16.vlgmr.msra.gmra.mxu0 %v1228_v30 }
 0x466   : > { %2813 = vmatpush3.bf16.msra.mxu1 %v3342_v20  ;;  %2873 = vmatpush3.bf16.msra.mxu0 %v3788_v27  ;;  %v3801_v20 = vld [vmem:[%s4133_s2 + $0x30] sm:$0xff]  }
 0x467   : > { %2814 = vmatprep.subr.bf16.mxu1 %v3218_v17  ;;  %2874 = vmatprep.subr.bf16.mxu0 %v3218_v17 }
 0x468   : > { %2828 = vmatprep.mubr.msk.bf16.mxu1 %vm3219_vm0, %v3218_v17  ;;  %2888 = vmatprep.mubr.msk.bf16.mxu0 %vm3219_vm0, %v3218_v17 }
 0x46a   : > { %2815 = vmatpush3.bf16.msra.mxu1 %v3354_v22  ;;  %2875 = vmatpush3.bf16.msra.mxu0 %v3801_v20  ;;  %v2122_v22 = vld [vmem:[%s3475_s10 + $0x48] sm:$0xff] }
 0x46b   : > { %2816 = vmatprep.subr.bf16.mxu1 %v3218_v17  ;;  %2876 = vmatprep.subr.bf16.mxu0 %v3218_v17 }
 0x46e   : > { %2817 = vmatpush3.bf16.msra.mxu1 %v3366_v24  ;;  %2877 = vmatpush3.bf16.msra.mxu0 %v3810_v31  ;;  %v3820_v24 = vld [vmem:[%s4133_s2 + $0x20] sm:$0xff]  }
 0x46f   : > { %2818 = vmatprep.subr.bf16.mxu1 %v3218_v17  ;;  %2878 = vmatprep.subr.bf16.mxu0 %v3218_v17 }
 0x472   : > { %v1171_v37 = vpop.f32.mrf.mxu1  ;;  %v1305_v38 = vpop.f32.mrf.mxu0  ;;  %2819 = vmatpush3.bf16.msra.mxu1 %v3438_v32  ;;  %2879 = vmatpush3.bf16.msra.mxu0 %v3820_v24 }
 0x473   : > { %2120 = vst [vmem:[%s3553_s15 + $0x38] sm:$0xff] %v1171_v37  ;;  %v1311_v39 = vadd.f32 %v2122_v22, %v1305_v38  ;;  %2820 = vmatprep.subr.bf16.mxu1 %v3218_v17  ;;  %2880 = vmatprep.subr.bf16.mxu0 %v3218_v17 }
 0x474   : > { %v2750_v40 = vpop.f32.mrf.mxu1  ;;  %v2810_v41 = vpop.f32.mrf.mxu0 }
 0x475   : > { %3148 = vtanh.f32 %v1311_v39 }
 0x476   : > { %v1174_v42 = vpop.f32.mrf.mxu1  ;;  %v1308_v43 = vpop.f32.mrf.mxu0  ;;  %2821 = vmatpush3.bf16.msra.mxu1 %v3446_v33  ;;  %2881 = vmatpush3.bf16.msra.mxu0 %v3830_v44 }
 0x477   : > { %2822 = vmatprep.subr.bf16.mxu1 %v3218_v17  ;;  %2882 = vmatprep.subr.bf16.mxu0 %v3218_v17 }
 0x478   : > { %v2751_v45 = vpop.f32.mrf.mxu1  ;;  %v2811_v46 = vpop.f32.mrf.mxu0 }
 0x479   : > { %v2133_v45 = vld [vmem:[%s3475_s10 + $0x70] sm:$0xff] }
 0x47a   : > { %2823 = vmatpush3.bf16.msra.mxu1 %v3453_v34  ;;  %2883 = vmatpush3.bf16.msra.mxu0 %v3839_v47 }
 0x47b   : > { %2824 = vmatprep.subr.bf16.mxu1 %v3218_v17  ;;  %2884 = vmatprep.subr.bf16.mxu0 %v3218_v17 }
 0x47e   : > { %2825 = vmatpush3.bf16.msra.mxu1 %v3459_v35  ;;  %2885 = vmatpush3.bf16.msra.mxu0 %v3848_v48 }
 0x47f   : > { %2826 = vmatprep.subr.bf16.mxu1 %v3218_v17  ;;  %2886 = vmatprep.subr.bf16.mxu0 %v3218_v17 }
 0x482   : > { %v3149_v49 = vpop.eup %3148  ;;  %2827 = vmatpush3.bf16.msra.mxu1 %v3466_v36  ;;  %2887 = vmatpush3.bf16.msra.mxu0 %v3857_v50 }
 0x483   : > { %v1314_v51 = vpack.c.bf16 %v3149_v49, %v3149_v49  ;;  %2852 = vmatprep.subr.bf16.mxu1 %v3218_v17  ;;  %2912 = vmatprep.subr.bf16.mxu0 %v3218_v17 }
 0x485   : > { %2829 = vmatmul.mubr.bf16.vlgmr.msra.gmra.mxu1 %v1314_v51  ;;  %2889 = vmatmul.mubr.bf16.vlgmr.msra.gmra.mxu0 %v1314_v51 }
 0x486   : > { %2853 = vmatpush3.bf16.msra.mxu1 %v3865_v52  ;;  %2913 = vmatpush3.bf16.msra.mxu0 %v3788_v27 }
 0x487   : > { %2854 = vmatprep.subr.bf16.mxu1 %v3218_v17  ;;  %2914 = vmatprep.subr.bf16.mxu0 %v3218_v17 }
 0x488   : > { %2868 = vmatprep.mubr.msk.bf16.mxu1 %vm3219_vm0, %v3218_v17  ;;  %2928 = vmatprep.mubr.msk.bf16.mxu0 %vm3219_vm0, %v3218_v17 }
 0x48a   : > { %2855 = vmatpush3.bf16.msra.mxu1 %v3878_v53  ;;  %2915 = vmatpush3.bf16.msra.mxu0 %v3801_v20 }
 0x48b   : > { %2856 = vmatprep.subr.bf16.mxu1 %v3218_v17  ;;  %2916 = vmatprep.subr.bf16.mxu0 %v3218_v17 }
 0x48e   : > { %2857 = vmatpush3.bf16.msra.mxu1 %v3887_v54  ;;  %2917 = vmatpush3.bf16.msra.mxu0 %v3810_v31 }
 0x48f   : > { %2858 = vmatprep.subr.bf16.mxu1 %v3218_v17  ;;  %2918 = vmatprep.subr.bf16.mxu0 %v3218_v17 }
 0x492   : > { %2859 = vmatpush3.bf16.msra.mxu1 %v3438_v32  ;;  %2919 = vmatpush3.bf16.msra.mxu0 %v3820_v24  ;;  %v2125_v32 = vld [vmem:[%s3475_s10 + $0x50] sm:$0xff] }
 0x493   : > { %2860 = vmatprep.subr.bf16.mxu1 %v3218_v17  ;;  %2920 = vmatprep.subr.bf16.mxu0 %v3218_v17 }
 0x496   : > { %2861 = vmatpush3.bf16.msra.mxu1 %v3446_v33  ;;  %2921 = vmatpush3.bf16.msra.mxu0 %v3830_v44 }
 0x497   : > { %2862 = vmatprep.subr.bf16.mxu1 %v3218_v17  ;;  %2922 = vmatprep.subr.bf16.mxu0 %v3218_v17 }
 0x49a   : > { %2863 = vmatpush3.bf16.msra.mxu1 %v3453_v34  ;;  %2923 = vmatpush3.bf16.msra.mxu0 %v3839_v47 }
 0x49b   : > { %2864 = vmatprep.subr.bf16.mxu1 %v3218_v17  ;;  %2924 = vmatprep.subr.bf16.mxu0 %v3218_v17 }
 0x49e   : > { %2865 = vmatpush3.bf16.msra.mxu1 %v3459_v35  ;;  %2925 = vmatpush3.bf16.msra.mxu0 %v3848_v48 }
 0x49f   : > { %2866 = vmatprep.subr.bf16.mxu1 %v3218_v17  ;;  %2926 = vmatprep.subr.bf16.mxu0 %v3218_v17 }
 0x4a2   : > { %2867 = vmatpush3.bf16.msra.mxu1 %v3466_v36  ;;  %2927 = vmatpush3.bf16.msra.mxu0 %v3857_v50 }
 0x4a3   : > { %2892 = vmatprep.subr.bf16.mxu1 %v3218_v17  ;;  %2952 = vmatprep.subr.bf16.mxu0 %v3218_v17 }
 0x525   : > { %v1263_v33 = vpop.f32.mrf.mxu1  ;;  %v1397_v34 = vpop.f32.mrf.mxu0 }
 0x526   : > { %2123 = vst [vmem:[%s3553_s15 + $0x40] sm:$0xff] %v1263_v33  ;;  %v1403_v55 = vadd.f32 %v2125_v32, %v1397_v34 }
 0x527   : > { %v2790_v35 = vpop.f32.mrf.mxu1  ;;  %v2850_v56 = vpop.f32.mrf.mxu0 }
 0x528   : > { %3150 = vtanh.f32 %v1403_v55  ;;  %v2134_v56 = vld [vmem:[%s3475_s10 + $0x78] sm:$0xff] }
 0x529   : > { %v1266_v57 = vpop.f32.mrf.mxu1  ;;  %v1400_v58 = vpop.f32.mrf.mxu0 }
 0x52b   : > { %v2791_v59 = vpop.f32.mrf.mxu1  ;;  %v2851_v60 = vpop.f32.mrf.mxu0 }
 0x535   : > { %v3151_v61 = vpop.eup %3150 }
 0x536   : > { %v1406_v36 = vpack.c.bf16 %v3151_v61, %v3151_v61 }
 0x538   : > { %2869 = vmatmul.mubr.bf16.vlgmr.msra.gmra.mxu1 %v1406_v36  ;;  %2929 = vmatmul.mubr.bf16.vlgmr.msra.gmra.mxu0 %v1406_v36 }
 0x539   : > { %2893 = vmatpush3.bf16.msra.mxu1 %v3865_v52  ;;  %2953 = vmatpush3.bf16.msra.mxu0 %v3788_v27 }
 0x53a   : > { %2894 = vmatprep.subr.bf16.mxu1 %v3218_v17  ;;  %2954 = vmatprep.subr.bf16.mxu0 %v3218_v17 }
 0x53b   : > { %2908 = vmatprep.mubr.msk.bf16.mxu1 %vm3219_vm0, %v3218_v17  ;;  %2968 = vmatprep.mubr.msk.bf16.mxu0 %vm3219_vm0, %v3218_v17 }
 0x53d   : > { %2895 = vmatpush3.bf16.msra.mxu1 %v3878_v53  ;;  %2955 = vmatpush3.bf16.msra.mxu0 %v3801_v20 }
 0x53e   : > { %2896 = vmatprep.subr.bf16.mxu1 %v3218_v17  ;;  %2956 = vmatprep.subr.bf16.mxu0 %v3218_v17 }
 0x541   : > { %2897 = vmatpush3.bf16.msra.mxu1 %v3887_v54  ;;  %2957 = vmatpush3.bf16.msra.mxu0 %v3810_v31 }
 0x542   : > { %2898 = vmatprep.subr.bf16.mxu1 %v3218_v17  ;;  %2958 = vmatprep.subr.bf16.mxu0 %v3218_v17 }
 0x545   : > { %v1349_v63 = vpop.f32.mrf.mxu1  ;;  %v1483_v0 = vpop.f32.mrf.mxu0  ;;  %2899 = vmatpush3.bf16.msra.mxu1 %v3935_v1  ;;  %2959 = vmatpush3.bf16.msra.mxu0 %v3820_v24 }
 0x546   : > { %2124 = vst [vmem:[%s3553_s15 + $0x48] sm:$0xff] %v1349_v63  ;;  %v1489_v2 = vadd.f32 %v2126_v62, %v1483_v0  ;;  %2900 = vmatprep.subr.bf16.mxu1 %v3218_v17  ;;  %2960 = vmatprep.subr.bf16.mxu0 %v3218_v17 }
 0x547   : > { %v2830_v3 = vpop.f32.mrf.mxu1  ;;  %v2890_v4 = vpop.f32.mrf.mxu0 }
 0x548   : > { %3152 = vtanh.f32 %v1489_v2 }
 0x549   : > { %v1352_v5 = vpop.f32.mrf.mxu1  ;;  %v1486_v6 = vpop.f32.mrf.mxu0  ;;  %2901 = vmatpush3.bf16.msra.mxu1 %v3945_v7  ;;  %2961 = vmatpush3.bf16.msra.mxu0 %v3830_v44 }
 0x54a   : > { %2902 = vmatprep.subr.bf16.mxu1 %v3218_v17  ;;  %2962 = vmatprep.subr.bf16.mxu0 %v3218_v17 }
 0x54b   : > { %v2831_v8 = vpop.f32.mrf.mxu1  ;;  %v2891_v9 = vpop.f32.mrf.mxu0 }
 0x54c   : > { %v1965_v8 = vld [vmem:[%s3553_s15 + $0x8] sm:$0xff] (%p3280_p6)  ;;  %v1967_v9 = vld [vmem:[%s3553_s15 + $0x10] sm:$0xff] (%p3280_p6) }
 0x54d   : > { %2903 = vmatpush3.bf16.msra.mxu1 %v3954_v10  ;;  %2963 = vmatpush3.bf16.msra.mxu0 %v3839_v47 }
 0x54e   : > { %2904 = vmatprep.subr.bf16.mxu1 %v3218_v17  ;;  %2964 = vmatprep.subr.bf16.mxu0 %v3218_v17 }
 0x551   : > { %2905 = vmatpush3.bf16.msra.mxu1 %v3963_v11  ;;  %2965 = vmatpush3.bf16.msra.mxu0 %v3848_v48 }
 0x552   : > { %2906 = vmatprep.subr.bf16.mxu1 %v3218_v17  ;;  %2966 = vmatprep.subr.bf16.mxu0 %v3218_v17 }
 0x555   : > { %v3153_v12 = vpop.eup %3152  ;;  %2907 = vmatpush3.bf16.msra.mxu1 %v3972_v13  ;;  %2967 = vmatpush3.bf16.msra.mxu0 %v3857_v50 }
 0x556   : > { %v1492_v16 = vpack.c.bf16 %v3153_v12, %v3153_v12  ;;  %2932 = vmatprep.subr.bf16.mxu1 %v3218_v17  ;;  %2992 = vmatprep.subr.bf16.mxu0 %v3218_v17  ;;  %v1973_v12 = vld [vmem:[%s3553_s15 + $0x28] sm:$0xff] (%p3280_p6) }
 0x558   : > { %2909 = vmatmul.mubr.bf16.vlgmr.msra.gmra.mxu1 %v1492_v16  ;;  %2969 = vmatmul.mubr.bf16.vlgmr.msra.gmra.mxu0 %v1492_v16  ;;  %v1977_v16 = vld [vmem:[%s3553_s15 + $0x38] sm:$0xff] (%p3280_p6) }
 0x559   : > { %2933 = vmatpush3.bf16.msra.mxu1 %v3865_v52  ;;  %2993 = vmatpush3.bf16.msra.mxu0 %v3788_v27 }
 0x55a   : > { %2934 = vmatprep.subr.bf16.mxu1 %v3218_v17  ;;  %2994 = vmatprep.subr.bf16.mxu0 %v3218_v17 }
 0x55b   : > { %2948 = vmatprep.mubr.msk.bf16.mxu1 %vm3219_vm0, %v3218_v17  ;;  %3008 = vmatprep.mubr.msk.bf16.mxu0 %vm3219_vm0, %v3218_v17 }
 0x55d   : > { %2935 = vmatpush3.bf16.msra.mxu1 %v3878_v53  ;;  %2995 = vmatpush3.bf16.msra.mxu0 %v3801_v20 }
 0x55e   : > { %2936 = vmatprep.subr.bf16.mxu1 %v3218_v17  ;;  %2996 = vmatprep.subr.bf16.mxu0 %v3218_v17 }
 0x561   : > { %2937 = vmatpush3.bf16.msra.mxu1 %v3887_v54  ;;  %2997 = vmatpush3.bf16.msra.mxu0 %v3810_v31 }
 0x562   : > { %2938 = vmatprep.subr.bf16.mxu1 %v3218_v17  ;;  %2998 = vmatprep.subr.bf16.mxu0 %v3218_v17 }
 0x565   : > { %2939 = vmatpush3.bf16.msra.mxu1 %v3935_v1  ;;  %2999 = vmatpush3.bf16.msra.mxu0 %v3820_v24 }
 0x566   : > { %2940 = vmatprep.subr.bf16.mxu1 %v3218_v17  ;;  %3000 = vmatprep.subr.bf16.mxu0 %v3218_v17 }
 0x569   : > { %2941 = vmatpush3.bf16.msra.mxu1 %v3945_v7  ;;  %3001 = vmatpush3.bf16.msra.mxu0 %v3830_v44 }
 0x56a   : > { %2942 = vmatprep.subr.bf16.mxu1 %v3218_v17  ;;  %3002 = vmatprep.subr.bf16.mxu0 %v3218_v17 }
 0x56d   : > { %2943 = vmatpush3.bf16.msra.mxu1 %v3954_v10  ;;  %3003 = vmatpush3.bf16.msra.mxu0 %v3839_v47 }
 0x56e   : > { %2944 = vmatprep.subr.bf16.mxu1 %v3218_v17  ;;  %3004 = vmatprep.subr.bf16.mxu0 %v3218_v17 }
 0x571   : > { %2945 = vmatpush3.bf16.msra.mxu1 %v3963_v11  ;;  %3005 = vmatpush3.bf16.msra.mxu0 %v3848_v48 }
 0x572   : > { %2946 = vmatprep.subr.bf16.mxu1 %v3218_v17  ;;  %3006 = vmatprep.subr.bf16.mxu0 %v3218_v17 }
 0x575   : > { %2947 = vmatpush3.bf16.msra.mxu1 %v3972_v13  ;;  %3007 = vmatpush3.bf16.msra.mxu0 %v3857_v50 }
 0x576   : > { %2972 = vmatprep.subr.bf16.mxu1 %v3218_v17  ;;  %3032 = vmatprep.subr.bf16.mxu0 %v3218_v17 }
 0x5f8   : > { %v1441_v19 = vpop.f32.mrf.mxu1  ;;  %v1575_v21 = vpop.f32.mrf.mxu0 }
 0x5f9   : > { %2127 = vst [vmem:[%s3553_s15 + $0x50] sm:$0xff] %v1441_v19  ;;  %v1581_v23 = vadd.f32 %v2129_v18, %v1575_v21  ;;  %v1979_v18 = vld [vmem:[%s3553_s15 + $0x40] sm:$0xff] (%p3280_p6)  ;;  %v1981_v19 = vld [vmem:[%s3553_s15 + $0x48] sm:$0xff] (%p3280_p6) }
 0x5fa   : > { %v2870_v25 = vpop.f32.mrf.mxu1  ;;  %v2930_v26 = vpop.f32.mrf.mxu0 }
 0x5fb   : > { %3154 = vtanh.f32 %v1581_v23 }
 0x5fc   : > { %v1444_v14 = vpop.f32.mrf.mxu1  ;;  %v1578_v15 = vpop.f32.mrf.mxu0 }
 0x5fe   : > { %v2871_v28 = vpop.f32.mrf.mxu1  ;;  %v2931_v29 = vpop.f32.mrf.mxu0 }
 0x600   : > { %v1983_v21 = vld [vmem:[%s3553_s15 + $0x50] sm:$0xff] (%p3280_p6) }
 0x608   : > { %v3155_v30 = vpop.eup %3154 }
 0x609   : > { %v1584_v22 = vpack.c.bf16 %v3155_v30, %v3155_v30 }
 0x60b   : > { %2949 = vmatmul.mubr.bf16.vlgmr.msra.gmra.mxu1 %v1584_v22  ;;  %3009 = vmatmul.mubr.bf16.vlgmr.msra.gmra.mxu0 %v1584_v22 }
 0x60c   : > { %2973 = vmatpush3.bf16.msra.mxu1 %v3865_v52  ;;  %3033 = vmatpush3.bf16.msra.mxu0 %v3788_v27  ;;  %v2130_v27 = vld [vmem:[%s3475_s10 + $0x68] sm:$0xff]  ;;  %s2143_s10 = sshll.u32 (%p3280_p6), %s3208_s17, 4 }
 0x60d   : > { %2974 = vmatprep.subr.bf16.mxu1 %v3218_v17  ;;  %3034 = vmatprep.subr.bf16.mxu0 %v3218_v17  ;;  %s1904_s11 = scalar_lea.vmem (%p3280_p6), %s4135_s4, %s2143_s10 }
 0x60e   : > { %2988 = vmatprep.mubr.msk.bf16.mxu1 %vm3219_vm0, %v3218_v17  ;;  %3048 = vmatprep.mubr.msk.bf16.mxu0 %vm3219_vm0, %v3218_v17  ;;  %1966 = vst [vmem:[%s1904_s11 + $0x8] sm:$0xff] (%p3280_p6), %v1965_v8  ;;  %1968 = vst [vmem:[%s1904_s11 + $0x20] sm:$0xff] (%p3280_p6), %v1967_v9 }
 0x60f   : > { %1974 = vst [vmem:[%s1904_s11 + $0x48] sm:$0xff] (%p3280_p6), %v1973_v12  ;;  %1978 = vst [vmem:[%s1904_s11 + $0x68] sm:$0xff] (%p3280_p6), %v1977_v16 }
 0x610   : > { %2975 = vmatpush3.bf16.msra.mxu1 %v3878_v53  ;;  %3035 = vmatpush3.bf16.msra.mxu0 %v3801_v20  ;;  %1980 = vst [vmem:[%s1904_s11 + $0x80] sm:$0xff] (%p3280_p6), %v1979_v18  ;;  %1982 = vst [vmem:[%s1904_s11 + $0x88] sm:$0xff] (%p3280_p6), %v1981_v19 }
 0x611   : > { %2976 = vmatprep.subr.bf16.mxu1 %v3218_v17  ;;  %3036 = vmatprep.subr.bf16.mxu0 %v3218_v17  ;;  %1984 = vst [vmem:[%s1904_s11 + $0xa0] sm:$0xff] (%p3280_p6), %v1983_v21 }
 0x614   : > { %2977 = vmatpush3.bf16.msra.mxu1 %v3887_v54  ;;  %3037 = vmatpush3.bf16.msra.mxu0 %v3810_v31 }
 0x615   : > { %2978 = vmatprep.subr.bf16.mxu1 %v3218_v17  ;;  %3038 = vmatprep.subr.bf16.mxu0 %v3218_v17 }
 0x618   : > { %v1527_v37 = vpop.f32.mrf.mxu1  ;;  %v1661_v38 = vpop.f32.mrf.mxu0  ;;  %2979 = vmatpush3.bf16.msra.mxu1 %v3935_v1  ;;  %3039 = vmatpush3.bf16.msra.mxu0 %v3820_v24 }
 0x619   : > { %2128 = vst [vmem:[%s3553_s15 + $0x58] sm:$0xff] %v1527_v37  ;;  %v1667_v20 = vadd.f32 %v2130_v27, %v1661_v38  ;;  %2980 = vmatprep.subr.bf16.mxu1 %v3218_v17  ;;  %3040 = vmatprep.subr.bf16.mxu0 %v3218_v17 }
 0x61a   : > { %v2910_v39 = vpop.f32.mrf.mxu1  ;;  %v2970_v40 = vpop.f32.mrf.mxu0 }
 0x61b   : > { %3156 = vtanh.f32 %v1667_v20 }
 0x61c   : > { %v1530_v31 = vpop.f32.mrf.mxu1  ;;  %v1664_v41 = vpop.f32.mrf.mxu0  ;;  %2981 = vmatpush3.bf16.msra.mxu1 %v3945_v7  ;;  %3041 = vmatpush3.bf16.msra.mxu0 %v3830_v44 }
 0x61d   : > { %2982 = vmatprep.subr.bf16.mxu1 %v3218_v17  ;;  %3042 = vmatprep.subr.bf16.mxu0 %v3218_v17 }
 0x61e   : > { %v2911_v24 = vpop.f32.mrf.mxu1  ;;  %v2971_v42 = vpop.f32.mrf.mxu0 }
 0x620   : > { %2983 = vmatpush3.bf16.msra.mxu1 %v3954_v10  ;;  %3043 = vmatpush3.bf16.msra.mxu0 %v3839_v47  ;;  %v1985_v23 = vld [vmem:[%s3553_s15 + $0x58] sm:$0xff] (%p3280_p6) }
 0x621   : > { %2984 = vmatprep.subr.bf16.mxu1 %v3218_v17  ;;  %3044 = vmatprep.subr.bf16.mxu0 %v3218_v17  ;;  %1986 = vst [vmem:[%s1904_s11 + $0xa8] sm:$0xff] (%p3280_p6), %v1985_v23 }
 0x624   : > { %2985 = vmatpush3.bf16.msra.mxu1 %v3963_v11  ;;  %3045 = vmatpush3.bf16.msra.mxu0 %v3848_v48 }
 0x625   : > { %2986 = vmatprep.subr.bf16.mxu1 %v3218_v17  ;;  %3046 = vmatprep.subr.bf16.mxu0 %v3218_v17 }
 0x628   : > { %v3157_v43 = vpop.eup %3156  ;;  %2987 = vmatpush3.bf16.msra.mxu1 %v3972_v13  ;;  %3047 = vmatpush3.bf16.msra.mxu0 %v3857_v50 }
 0x629   : > { %v1670_v44 = vpack.c.bf16 %v3157_v43, %v3157_v43  ;;  %3012 = vmatprep.subr.bf16.mxu1 %v3218_v17 }
 0x62b   : > { %2989 = vmatmul.mubr.bf16.vlgmr.msra.gmra.mxu1 %v1670_v44  ;;  %3049 = vmatmul.mubr.bf16.vlgmr.msra.gmra.mxu0 %v1670_v44 }
 0x62c   : > { %3013 = vmatpush3.bf16.msra.mxu1 %v3865_v52  ;;  %3028 = vmatprep.mubr.msk.bf16.mxu1 %vm3219_vm0, %v3218_v17 }
 0x62d   : > { %3014 = vmatprep.subr.bf16.mxu1 %v3218_v17 }
 0x630   : > { %3015 = vmatpush3.bf16.msra.mxu1 %v3878_v53 }
 0x631   : > { %3016 = vmatprep.subr.bf16.mxu1 %v3218_v17 }
 0x634   : > { %3017 = vmatpush3.bf16.msra.mxu1 %v3887_v54 }
 0x635   : > { %3018 = vmatprep.subr.bf16.mxu1 %v3218_v17 }
 0x638   : > { %3019 = vmatpush3.bf16.msra.mxu1 %v3935_v1 }
 0x639   : > { %3020 = vmatprep.subr.bf16.mxu1 %v3218_v17 }
 0x63c   : > { %3021 = vmatpush3.bf16.msra.mxu1 %v3945_v7 }
 0x63d   : > { %3022 = vmatprep.subr.bf16.mxu1 %v3218_v17 }
 0x640   : > { %3023 = vmatpush3.bf16.msra.mxu1 %v3954_v10 }
 0x641   : > { %3024 = vmatprep.subr.bf16.mxu1 %v3218_v17 }
 0x644   : > { %3025 = vmatpush3.bf16.msra.mxu1 %v3963_v11 }
 0x645   : > { %3026 = vmatprep.subr.bf16.mxu1 %v3218_v17 }
 0x648   : > { %3027 = vmatpush3.bf16.msra.mxu1 %v3972_v13 }
 0x649   : > { %3052 = vmatprep.subr.bf16.mxu1 %v3218_v17 }
 0x6cb   : > { %v1619_v46 = vpop.f32.mrf.mxu1  ;;  %v1753_v47 = vpop.f32.mrf.mxu0 }
 0x6cc   : > { %2131 = vst [vmem:[%s3553_s15 + $0x60] sm:$0xff] %v1619_v46  ;;  %v1759_v48 = vadd.f32 %v2133_v45, %v1753_v47 }
 0x6cd   : > { %v2950_v49 = vpop.f32.mrf.mxu1  ;;  %v3010_v50 = vpop.f32.mrf.mxu0 }
 0x6ce   : > { %3158 = vtanh.f32 %v1759_v48 }
 0x6cf   : > { %v1622_v51 = vpop.f32.mrf.mxu1  ;;  %v1756_v32 = vpop.f32.mrf.mxu0 }
 0x6d1   : > { %v2951_v33 = vpop.f32.mrf.mxu1  ;;  %v3011_v34 = vpop.f32.mrf.mxu0 }
 0x6d3   : > { %v1987_v25 = vld [vmem:[%s3553_s15 + $0x60] sm:$0xff] (%p3280_p6) }
 0x6d4   : > { %1988 = vst [vmem:[%s1904_s11 + $0xc0] sm:$0xff] (%p3280_p6), %v1987_v25 }
 0x6db   : > { %v3159_v55 = vpop.eup %3158 }
 0x6dc   : > { %v1762_v35 = vpack.c.bf16 %v3159_v55, %v3159_v55 }
 0x6de   : > { %3029 = vmatmul.mubr.bf16.vlgmr.msra.gmra.mxu1 %v1762_v35 }
 0x6df   : > { %3053 = vmatpush3.bf16.msra.mxu1 %v3865_v52  ;;  %3068 = vmatprep.mubr.msk.bf16.mxu1 %vm3219_vm0, %v3218_v17 }
 0x6e0   : > { %3054 = vmatprep.subr.bf16.mxu1 %v3218_v17 }
 0x6e3   : > { %3055 = vmatpush3.bf16.msra.mxu1 %v3878_v53 }
 0x6e4   : > { %3056 = vmatprep.subr.bf16.mxu1 %v3218_v17 }
 0x6e7   : > { %3057 = vmatpush3.bf16.msra.mxu1 %v3887_v54 }
 0x6e8   : > { %3058 = vmatprep.subr.bf16.mxu1 %v3218_v17 }
 0x6eb   : > { %v1705_v57 = vpop.f32.mrf.mxu1  ;;  %v1839_v58 = vpop.f32.mrf.mxu0  ;;  %3059 = vmatpush3.bf16.msra.mxu1 %v3935_v1 }
 0x6ec   : > { %2132 = vst [vmem:[%s3553_s15 + $0x68] sm:$0xff] %v1705_v57  ;;  %v1845_v52 = vadd.f32 %v2134_v56, %v1839_v58  ;;  %3060 = vmatprep.subr.bf16.mxu1 %v3218_v17 }
 0x6ed   : > { %v2990_v59 = vpop.f32.mrf.mxu1  ;;  %v3050_v60 = vpop.f32.mrf.mxu0 }
 0x6ee   : > { %3160 = vtanh.f32 %v1845_v52 }
 0x6ef   : > { %v1708_v53 = vpop.f32.mrf.mxu1  ;;  %v1842_v61 = vpop.f32.mrf.mxu0  ;;  %3061 = vmatpush3.bf16.msra.mxu1 %v3945_v7 }
 0x6f0   : > { %3062 = vmatprep.subr.bf16.mxu1 %v3218_v17 }
 0x6f1   : > { %v2991_v54 = vpop.f32.mrf.mxu1  ;;  %v3051_v36 = vpop.f32.mrf.mxu0 }
 0x6f3   : > { %3063 = vmatpush3.bf16.msra.mxu1 %v3954_v10  ;;  %v1969_v10 = vld [vmem:[%s3553_s15 + $0x18] sm:$0xff] (%p3280_p6)  ;;  %v1989_v26 = vld [vmem:[%s3553_s15 + $0x68] sm:$0xff] (%p3280_p6) }
 0x6f4   : > { %3064 = vmatprep.subr.bf16.mxu1 %v3218_v17  ;;  %1970 = vst [vmem:[%s1904_s11 + $0x28] sm:$0xff] (%p3280_p6), %v1969_v10  ;;  %1990 = vst [vmem:[%s1904_s11 + $0xc8] sm:$0xff] (%p3280_p6), %v1989_v26 }
 0x6f7   : > { %3065 = vmatpush3.bf16.msra.mxu1 %v3963_v11  ;;  %v1971_v11 = vld [vmem:[%s3553_s15 + $0x20] sm:$0xff] (%p3280_p6) }
 0x6f8   : > { %3066 = vmatprep.subr.bf16.mxu1 %v3218_v17  ;;  %v1963_v17 = vld [vmem:[%s3553_s15] sm:$0xff] (%p3280_p6)  ;;  %1972 = vst [vmem:[%s1904_s11 + $0x40] sm:$0xff] (%p3280_p6), %v1971_v11 }
 0x6f9   : > { %1964 = vst [vmem:[%s1904_s11] sm:$0xff] (%p3280_p6), %v1963_v17 }
 0x6fb   : > { %v3161_v62 = vpop.eup %3160  ;;  %3067 = vmatpush3.bf16.msra.mxu1 %v3972_v13  ;;  %v1975_v13 = vld [vmem:[%s3553_s15 + $0x30] sm:$0xff] (%p3280_p6) }
 0x6fc   : > { %v1848_v63 = vpack.c.bf16 %v3161_v62, %v3161_v62  ;;  %1976 = vst [vmem:[%s1904_s11 + $0x60] sm:$0xff] (%p3280_p6), %v1975_v13 }
 0x6fe   : > { %3069 = vmatmul.mubr.bf16.vlgmr.msra.gmra.mxu1 %v1848_v63 }
 0x79e   : > { %v1797_v0 = vpop.f32.mrf.mxu1 }
 0x79f   : > { %2135 = vst [vmem:[%s3553_s15 + $0x70] sm:$0xff] %v1797_v0 }
 0x7a0   : > { %v3030_v1 = vpop.f32.mrf.mxu1 }
 0x7a2   : > { %v1800_v2 = vpop.f32.mrf.mxu1 }
 0x7a4   : > { %v3031_v3 = vpop.f32.mrf.mxu1 }
 0x7a6   : > { %v1991_v14 = vld [vmem:[%s3553_s15 + $0x70] sm:$0xff] (%p3280_p6) }
 0x7a7   : > { %1992 = vst [vmem:[%s1904_s11 + $0xe0] sm:$0xff] (%p3280_p6), %v1991_v14 }
 0x7be   : > { %v1883_v4 = vpop.f32.mrf.mxu1 }
 0x7bf   : > { %2136 = vst [vmem:[%s3553_s15 + $0x78] sm:$0xff] %v1883_v4 }
 0x7c0   : > { %v3070_v5 = vpop.f32.mrf.mxu1  ;;  %1898 = sbr.rel (!%p3280_p6) target bundleno = 1992 (0x7c8), region = 82 }
 0x7c2   : > { %v1886_v6 = vpop.f32.mrf.mxu1 }
 0x7c4   : > { %v3071_v7 = vpop.f32.mrf.mxu1 }
 0x7c6   : > { %v1993_v15 = vld [vmem:[%s3553_s15 + $0x78] sm:$0xff] }
 0x7c7   : > { %1994 = vst [vmem:[%s1904_s11 + $0xe8] sm:$0xff] %v1993_v15 }
 0x7c8 PF: > { %s14_s19 = sadd.s32 1, %s3216_s19   ;;  %s4137_s15 = smov %s3204_s16 }
 0x7c9   : > { %p11_p12 = scmp.ge.s32.totalorder %s14_s19, 4   ;;  %s4138_s16 = smov %s3285_s25 }
 0x7ca   : > { %s4139_s17 = smov %s3212_s18  ;;  %s4140_s18 = smov %s4142_s20 }
 0x7cb   :  { %13 = sbr.rel (!%p11_p12) target bundleno = 3 (0x3), region = 168 }

</bundles_post_ra>
